<compile_context>
chip_gen: v5e
topology: v5e:2x2
jax: 0.10.0
libtpu: 0.0.40
codegen_flags: <defaults>
</compile_context>

<pallas_src>
import functools
import math

import jax
import jax.numpy as jnp
from jax.experimental import pallas as pl
from jax.experimental.pallas import tpu as pltpu

MAX_REL = 4                    # max_relative_position
VOCAB = 2 * MAX_REL + 1        # 9
DEPTH = 100
PAD_SIZE = 64


def make_embeddings_table(depth=DEPTH, max_rel=MAX_REL):
    """Sinusoidal (vocab_size, depth) table, matching the PyTorch construction (f32)."""
    vocab_size = 2 * max_rel + 1
    position = jnp.arange(vocab_size, dtype=jnp.float32)[:, None]          # (V, 1)
    div_term = jnp.exp(jnp.arange(0, depth, 2, dtype=jnp.float32)
                       * (-math.log(10000.0) / depth))                     # (D/2,)
    table = jnp.zeros((vocab_size, depth), dtype=jnp.float32)
    table = table.at[:, 0::2].set(jnp.sin(position * div_term))
    table = table.at[:, 1::2].set(jnp.cos(position * div_term))
    return table                                                            # f32


def make_packed_table(depth=DEPTH, max_rel=MAX_REL):
    """bf16x2 split table (2V, D): rows [0:V]=hi, rows [V:2V]=lo, hi+lo ~= f32 table."""
    table = make_embeddings_table(depth, max_rel)
    hi = table.astype(jnp.bfloat16)
    lo = (table - hi.astype(jnp.float32)).astype(jnp.bfloat16)
    return jnp.concatenate([hi, lo], axis=0)                                # (18, D) bf16


def _pe_add_kernel(tab_ref, x_ref, o_ref, *, max_length, chunk_rows):
    # One grid step handles a (TL, P, D) slab of x, processed in row chunks so
    # intermediates stay small and overlap with the block DMA.
    b = pl.program_id(0)
    TL, P, D = o_ref.shape
    table = tab_ref[...]                                   # (2V, D) bf16, loaded once

    def do_chunk(row0, nrows):
        n = nrows * P
        # Flattened global element index k = (b*TL + row)*P + col, generated
        # directly at (n, 2V) width (no separate (n,1) array / lane broadcast).
        k = jax.lax.broadcasted_iota(jnp.int32, (n, 2 * VOCAB), 0) \
            + (b * TL + row0) * P
        v = jax.lax.broadcasted_iota(jnp.int32, (n, 2 * VOCAB), 1)
        pos = k % max_length
        dist = 2 * pos - (max_length - 1)
        idx = jnp.clip(dist, -MAX_REL, MAX_REL) + MAX_REL                   # in [0, V)
        # "two-hot" selector over the packed (hi|lo) table; 0/1 are exact in bf16.
        sel = ((v == idx) | (v == idx + VOCAB)).astype(jnp.bfloat16)        # (n, 2V)
        # Single bf16 MXU matmul with f32 accumulation -> hi[idx] + lo[idx].
        pe = jnp.dot(sel, table, preferred_element_type=jnp.float32)        # (n, D) f32
        pe = pe.reshape(nrows, P, D)                                        # leading-dim reshape
        xs = x_ref[pl.ds(row0, nrows), :, :].astype(jnp.float32)
        o_ref[pl.ds(row0, nrows), :, :] = (xs + pe).astype(o_ref.dtype)

    n_full = TL // chunk_rows
    rem = TL - n_full * chunk_rows
    if n_full == 1 and rem == 0:
        do_chunk(0, chunk_rows)
    else:
        if n_full > 0:
            def body(c, carry):
                do_chunk(pl.multiple_of(c * chunk_rows, chunk_rows), chunk_rows)
                return carry
            jax.lax.fori_loop(0, n_full, body, 0, unroll=True)
        if rem > 0:
            do_chunk(n_full * chunk_rows, rem)


def _chip_defaults():
    """(rows_per_block, min_grid_steps, vmem_limit_bytes) per TPU generation."""
    kind = ""
    try:
        kind = jax.devices()[0].device_kind.lower()
    except Exception:
        pass
    if "v7" in kind or "7x" in kind:
        # 2 TensorCores / 64 MiB VMEM: 4 MiB blocks, >= 4 grid steps so each
        # core gets >= 2 steps and can double-buffer.
        return 128, 4, 40 * 1024 * 1024
    if "v6" in kind:
        # Single TC / 128 MiB VMEM: bigger blocks amortize per-step overhead.
        return 256, 1, 64 * 1024 * 1024
    # v5e (explicit limit mandatory: default scoped VMEM is 16 MiB) and unknown.
    return 256, 1, 48 * 1024 * 1024


def positional_encoding_forward(x, *, rows_per_block=None, chunk_rows=None, donate_x=False):
    """out = x + relative_position_encoding(100, len(x));  dropout = identity (eval)."""
    L, P, D = x.shape
    assert P == PAD_SIZE and D == DEPTH, "x must be (len(x), 64, 100)"
    assert L * PAD_SIZE < 2 ** 31, "flattened int32 index would overflow"

    default_rows, min_grid, vmem_limit = _chip_defaults()
    if rows_per_block is None:
        rows_per_block = default_rows

    TL = max(1, min(L, rows_per_block))
    if min_grid > 1 and L > 1:
        # Dual-TensorCore chips only: guarantee enough grid steps for megacore
        # sharding + per-core double-buffering (no-op split on single-TC chips).
        TL = min(TL, max(1, L // min_grid))
    grid = (pl.cdiv(L, TL),)

    if chunk_rows is None:
        chunk_rows = 32                          # 32*64 = 2048 flattened rows per chunk
    chunk_rows = max(1, min(chunk_rows, TL))

    table = make_packed_table(D, MAX_REL)        # (18, 100) bf16, ~3.6 KB

    kernel = functools.partial(_pe_add_kernel, max_length=L, chunk_rows=chunk_rows)

    extra = {}
    if donate_x:
        # x and out are shape/dtype identical; alias to drop one HBM allocation.
        extra["input_output_aliases"] = {1: 0}

    return pl.pallas_call(
        kernel,
        out_shape=jax.ShapeDtypeStruct(x.shape, x.dtype),
        grid=grid,
        in_specs=[
            pl.BlockSpec((2 * VOCAB, D), lambda i: (0, 0)),   # tiny packed table, resident
            pl.BlockSpec((TL, P, D), lambda i: (i, 0, 0)),    # TL rows of x per step
        ],
        out_specs=pl.BlockSpec((TL, P, D), lambda i: (i, 0, 0)),
        compiler_params=pltpu.CompilerParams(
            dimension_semantics=("parallel",),
            vmem_limit_bytes=vmem_limit,
        ),
        **extra,
    )(table, x)


def _reference_forward(x):
    """Pure-JAX replica of the PyTorch forward (eval mode) for sanity checking."""
    L, P, D = x.shape
    table = make_embeddings_table(D, MAX_REL)
    k = jnp.arange(L * P) % L
    idx = jnp.clip(2 * k - (L - 1), -MAX_REL, MAX_REL) + MAX_REL
    pe = table[idx].reshape(L, P, D)
    return (x.astype(jnp.float32) + pe).astype(x.dtype)


if __name__ == "__main__":
    key = jax.random.PRNGKey(0)

    # Small shape consistent with the module: x = (len(x)=8, 64, 100)
    L = 8
    x = jax.random.normal(key, (L, PAD_SIZE, DEPTH), dtype=jnp.float32)
    out = jax.block_until_ready(positional_encoding_forward(x))
    ref = _reference_forward(x)
    assert out.shape == x.shape and out.dtype == x.dtype
    assert jnp.allclose(out, ref, atol=2e-5, rtol=1e-5), "mismatch vs reference"

    # Partial last block path (L not divisible by TL on either tiling policy).
    L2 = 21
    x2 = jax.random.normal(jax.random.PRNGKey(1), (L2, PAD_SIZE, DEPTH), dtype=jnp.float32)
    out2 = jax.block_until_ready(positional_encoding_forward(x2, rows_per_block=8))
    assert jnp.allclose(out2, _reference_forward(x2), atol=2e-5, rtol=1e-5), \
        "mismatch (partial block)"

    # Chunked-compute path: fori_loop over full chunks + static remainder chunk.
    L3 = 48
    x3 = jax.random.normal(jax.random.PRNGKey(2), (L3, PAD_SIZE, DEPTH), dtype=jnp.float32)
    out3 = jax.block_until_ready(
        positional_encoding_forward(x3, rows_per_block=48, chunk_rows=5))
    assert jnp.allclose(out3, _reference_forward(x3), atol=2e-5, rtol=1e-5), \
        "mismatch (chunked)"

    print("KERNEL_OK")
</pallas_src>

<mosaic_0001>
module attributes {stable_mosaic.version = 11 : i64} {
  func.func @_pe_add_kernel(%arg0: i32, %arg1: memref<18x100xbf16, #tpu.memory_space<vmem>>, %arg2: memref<8x64x100xf32, #tpu.memory_space<vmem>>, %arg3: memref<8x64x100xf32, #tpu.memory_space<vmem>>) attributes {dimension_semantics = [#tpu.dimension_semantics<parallel>], iteration_bounds = array<i64: 1>, scalar_prefetch = 0 : i64, scratch_operands = 0 : i64, tpu.core_type = #tpu.core_type<tc>, window_params = [{pipeline_mode = #tpu.pipeline_mode<synchronous>, transform_indices = @transform_0, window_bounds = array<i64: 18, 100>}, {transform_indices = @transform_1, window_bounds = array<i64: 8, 64, 100>}, {transform_indices = @transform_2, window_bounds = array<i64: 8, 64, 100>}]} {
    %c0 = arith.constant 0 : index
    %c0_0 = arith.constant 0 : index
    %0 = vector.load %arg1[%c0, %c0_0] : memref<18x100xbf16, #tpu.memory_space<vmem>>, vector<18x100xbf16>
    %1 = tpu.iota {dimensions = array<i32: 0>} : vector<512x18xi32>
    %c8_i32 = arith.constant 8 : i32
    %2 = arith.muli %arg0, %c8_i32 : i32
    %c0_i32 = arith.constant 0 : i32
    %3 = arith.addi %2, %c0_i32 : i32
    %c64_i32 = arith.constant 64 : i32
    %4 = arith.muli %3, %c64_i32 : i32
    %5 = vector.broadcast %4 : i32 to vector<512x18xi32>
    %6 = arith.addi %1, %5 : vector<512x18xi32>
    %7 = tpu.iota {dimensions = array<i32: 1>} : vector<512x18xi32>
    %c8_i32_1 = arith.constant 8 : i32
    %c0_i32_2 = arith.constant 0 : i32
    %8 = arith.cmpi eq, %c8_i32_1, %c0_i32_2 : i32
    %c1_i32 = arith.constant 1 : i32
    %9 = arith.select %8, %c1_i32, %c8_i32_1 : i32
    %10 = vector.broadcast %9 : i32 to vector<512x18xi32>
    %11 = arith.remsi %6, %10 : vector<512x18xi32>
    %c0_i32_3 = arith.constant 0 : i32
    %12 = vector.broadcast %c0_i32_3 : i32 to vector<512x18xi32>
    %13 = arith.cmpi ne, %11, %12 : vector<512x18xi32>
    %c0_i32_4 = arith.constant 0 : i32
    %14 = vector.broadcast %c0_i32_4 : i32 to vector<512x18xi32>
    %15 = arith.cmpi slt, %11, %14 : vector<512x18xi32>
    %c0_i32_5 = arith.constant 0 : i32
    %16 = arith.cmpi slt, %9, %c0_i32_5 : i32
    %17 = vector.broadcast %16 : i1 to vector<512x18xi1>
    %18 = vector.broadcast %17 : vector<512x18xi1> to vector<512x18xi1>
    %19 = arith.xori %15, %18 : vector<512x18xi1>
    %20 = arith.andi %19, %13 : vector<512x18xi1>
    %21 = vector.broadcast %9 : i32 to vector<512x18xi32>
    %22 = arith.addi %11, %21 : vector<512x18xi32>
    %23 = arith.select %20, %22, %11 : vector<512x18xi1>, vector<512x18xi32>
    %c2_i32 = arith.constant 2 : i32
    %24 = vector.broadcast %c2_i32 : i32 to vector<512x18xi32>
    %25 = arith.muli %24, %23 : vector<512x18xi32>
    %c7_i32 = arith.constant 7 : i32
    %26 = vector.broadcast %c7_i32 : i32 to vector<512x18xi32>
    %27 = arith.subi %25, %26 : vector<512x18xi32>
    %c-4_i32 = arith.constant -4 : i32
    %c4_i32 = arith.constant 4 : i32
    %28 = vector.broadcast %c-4_i32 : i32 to vector<512x18xi32>
    %29 = arith.maxsi %28, %27 : vector<512x18xi32>
    %30 = vector.broadcast %c4_i32 : i32 to vector<512x18xi32>
    %31 = arith.minsi %30, %29 : vector<512x18xi32>
    %c4_i32_6 = arith.constant 4 : i32
    %32 = vector.broadcast %c4_i32_6 : i32 to vector<512x18xi32>
    %33 = arith.addi %31, %32 : vector<512x18xi32>
    %34 = arith.cmpi eq, %7, %33 : vector<512x18xi32>
    %c9_i32 = arith.constant 9 : i32
    %35 = vector.broadcast %c9_i32 : i32 to vector<512x18xi32>
    %36 = arith.addi %33, %35 : vector<512x18xi32>
    %37 = arith.cmpi eq, %7, %36 : vector<512x18xi32>
    %38 = arith.ori %34, %37 : vector<512x18xi1>
    %39 = arith.extui %38 : vector<512x18xi1> to vector<512x18xi32>
    %40 = arith.sitofp %39 : vector<512x18xi32> to vector<512x18xf32>
    %41 = arith.truncf %40 : vector<512x18xf32> to vector<512x18xbf16>
    %cst = arith.constant dense<0.000000e+00> : vector<512x100xf32>
    %42 = tpu.matmul %41, %0, %cst {dimension_numbers = #tpu.dot_dimension_numbers<[1], [0], [0], [1], [0, 0, 1, 1], [], []>} : vector<512x18xbf16>, vector<18x100xbf16>, vector<512x100xf32> -> vector<512x100xf32>
    %43 = vector.shape_cast %42 : vector<512x100xf32> to vector<8x64x100xf32>
    %c0_7 = arith.constant 0 : index
    %c0_8 = arith.constant 0 : index
    %c0_9 = arith.constant 0 : index
    %44 = vector.load %arg2[%c0_7, %c0_8, %c0_9] : memref<8x64x100xf32, #tpu.memory_space<vmem>>, vector<8x64x100xf32>
    %45 = arith.addf %44, %43 : vector<8x64x100xf32>
    %c0_10 = arith.constant 0 : index
    %c0_11 = arith.constant 0 : index
    %c0_12 = arith.constant 0 : index
    %46 = vector.load %arg3[%c0_10, %c0_11, %c0_12] : memref<8x64x100xf32, #tpu.memory_space<vmem>>, vector<8x64x100xf32>
    tpu.vector_store %arg3[%c0_10, %c0_11, %c0_12], %45 {strides = array<i32>} : memref<8x64x100xf32, #tpu.memory_space<vmem>>, vector<8x64x100xf32>,
    return
  }
  func.func @transform_0(%arg0: i32) -> (i32, i32) {
    %c0_i32 = arith.constant 0 : i32
    %c0_i32_0 = arith.constant 0 : i32
    %c0_i32_1 = arith.constant 0 : i32
    return %c0_i32, %c0_i32_0 : i32, i32
  }
  func.func @transform_1(%arg0: i32) -> (i32, i32, i32) {
    %c0_i32 = arith.constant 0 : i32
    %c0_i32_0 = arith.constant 0 : i32
    %c0_i32_1 = arith.constant 0 : i32
    return %arg0, %c0_i32, %c0_i32_0 : i32, i32, i32
  }
  func.func @transform_2(%arg0: i32) -> (i32, i32, i32) {
    %c0_i32 = arith.constant 0 : i32
    %c0_i32_0 = arith.constant 0 : i32
    %c0_i32_1 = arith.constant 0 : i32
    return %arg0, %c0_i32, %c0_i32_0 : i32, i32, i32
  }
}

</mosaic_0001>

<bundles_post_ra>
// kernel: tpu_custom_call.1
= control target key start
LH: loop header
LB: loop body
LE: loop exit
PB: predicated region body
PF: predicated region fallthrough
CT: control target
= control target key end

     0   :  { %7 = vsyncpa [#allocation3], 0  ;;  %s3006_s0 = inlined_call_operand.hbm [shape: bf16[18,100], index: 0, kind: input, shape index: {}]   ;;  %s3007_s1 = inlined_call_operand.hbm [shape: f32[8,64,100], index: 1, kind: input, shape index: {}]   ;;  %s3008_s2 = inlined_call_operand.hbm [shape: f32[8,64,100], index: 2, kind: output, shape index: {}]  }
   0x1   :  { %8 = vsyncpa [#allocation6], 0 }
   0x2   :  { %9 = vsyncpa [#allocation4], 0  ;;  %s14_s11 = sshll.u32 %s3006_s0, 4  ;;  %s2562_s12 = smov [#allocation2]   ;;  %s15_s11 = int_to_ptr.hbm [resolvable:$true] %s14_s11 }
   0x3   :  { %s16_s13 = sshll.u32 %s2562_s12, 4  ;;  %s27_s16 = sshll.u32 %s3007_s1, 4  ;;  %s17_s13 = int_to_ptr.vmem [resolvable:$true] %s16_s13  ;;  %s28_s16 = int_to_ptr.hbm [resolvable:$true] %s27_s16 }
   0x4   :  { %s2563_s17 = smov 64   ;;  %s2564_s18 = smov 4  }
   0x5   :  { %22 = dma.hbm_to_vmem [thread:$0]  %s15_s11, 192, %s17_s13, [#allocation3], %s2563_s17, %s2563_s17, %s2564_s18  }
   0x6   :  { %s2565_s19 = smov [#allocation5]   ;;  %s2566_s21 = smov 128  }
   0x7   :  { %s29_s20 = sshll.u32 %s2565_s19, 4  ;;  %s2567_s22 = smov 8   ;;  %s30_s20 = int_to_ptr.vmem [resolvable:$true] %s29_s20 }
   0x8   :  { %35 = dma.hbm_to_vmem [thread:$0]  %s28_s16, 8192, %s30_s20, [#allocation6], %s2566_s21, %s2566_s21, %s2567_s22  }
   0x9   :  { %2556 = dma.done.wait [#allocation3], 192  }
   0xa   :  { %2557 = vsyncadd [#allocation3], 4294967104 }
   0xb   :  { %2558 = dma.done.wait [#allocation6], 8192  }
   0xc   :  { %2559 = vsyncadd [#allocation6], 4294959104  ;;  %v48_v0 = vlaneseq  ;;  %vm1919_vm0 = vcmask 1040384   ;;  %v47_v14 = vld [vmem:[#allocation2 + $0x8] sm:$0x1]  ;;  %v2469_v35 = vld [vmem:[#allocation2] sm:$0xff] }
   0xd   :  { %v1818_v19 = vunpack.c.l.b16 %v47_v14  ;;  %vm1822_vm7 = vcmask 146432   ;;  %v2568_v53 = vmov 0.0   ;;  %s2569_s0 = smov [#allocation7]   ;;  %s2291_s25 = sshll.u32 %s3008_s2, 4  ;;  %s2292_s25 = int_to_ptr.hbm [resolvable:$true] %s2291_s25 }
   0xe   :  { %v2594_v1 = vshrl.u32 %v48_v0, 7  ;;  %v2608_v15 = vand.u32 127, %v48_v0  ;;  %s2289_s1 = sshll.u32 %s2569_s0, 4  ;;  %s2290_s1 = int_to_ptr.vmem [resolvable:$true] %s2289_s1 }
   0xf   :  { %v1820_v27 = vpack.c.b16 %v1818_v19, %v1818_v19 }
  0x10   :  { %v50_v2 = vadd.s32 8, %v2594_v1  ;;  %v185_v3 = vand.u32 7, %v2594_v1  ;;  %v65_v4 = vadd.s32 128, %v2594_v1  ;;  %v66_v5 = vadd.s32 136, %v2594_v1 }
  0x11   :  { %v81_v6 = vadd.s32 256, %v2594_v1  ;;  %v82_v7 = vadd.s32 264, %v2594_v1  ;;  %v2603_v8 = vadd.s32 384, %v2594_v1  ;;  %v2606_v9 = vadd.s32 392, %v2594_v1 }
  0x12   :  { %v192_v10 = vand.u32 7, %v50_v2  ;;  %v949_v11 = vmul.u32 2, %v185_v3  ;;  %v297_v12 = vand.u32 7, %v65_v4  ;;  %v304_v13 = vand.u32 7, %v66_v5 }
  0x13   :  { %v409_v16 = vand.u32 7, %v81_v6  ;;  %v416_v17 = vand.u32 7, %v82_v7  ;;  %v521_v18 = vand.u32 7, %v2603_v8  ;;  %v528_v26 = vand.u32 7, %v2606_v9 }
  0x14   :  { %v950_v20 = vmul.u32 2, %v192_v10  ;;  %v2305_v21 = vadd.s32 4294967289, %v949_v11  ;;  %v965_v22 = vmul.u32 2, %v297_v12  ;;  %v966_v23 = vmul.u32 2, %v304_v13 }
  0x15   :  { %v981_v24 = vmul.u32 2, %v409_v16  ;;  %v982_v25 = vmul.u32 2, %v416_v17  ;;  %v1921_v34 = vsel %vm1919_vm0, %v1820_v27, 0  ;;  %v997_v60 = vmul.u32 2, %v521_v18 }
  0x16   :  { %v2306_v28 = vadd.s32 4294967289, %v950_v20  ;;  %vm1077_vm1 = vcmp.gt.s32.totalorder %v2305_v21, 4294967292  ;;  %v2321_v29 = vadd.s32 4294967289, %v965_v22  ;;  %v2322_v31 = vadd.s32 4294967289, %v966_v23  ;;  %1929 = vmatpush.bf16.msra.mxu0 %v1921_v34  ;;  %2470 = vmatpush.bf16.msra.mxu1 %v1921_v34 }
  0x17   :  { %v1078_v30 = vsel %vm1077_vm1, %v2305_v21, 4294967292  ;;  %v2337_v32 = vadd.s32 4294967289, %v981_v24  ;;  %v2338_v33 = vadd.s32 4294967289, %v982_v25  ;;  %2471 = vmatpush.bf16.msra.mxu2 %v1921_v34  ;;  %2472 = vmatpush.bf16.msra.mxu3 %v1921_v34  ;;  %v998_v63 = vmul.u32 2, %v528_v26 }
  0x18   :  { %vm1079_vm2 = vcmp.gt.s32.totalorder %v2306_v28, 4294967292  ;;  %vm1205_vm3 = vcmp.lt.s32.totalorder %v1078_v30, 4  ;;  %vm1109_vm4 = vcmp.gt.s32.totalorder %v2321_v29, 4294967292  ;;  %vm1111_vm5 = vcmp.gt.s32.totalorder %v2322_v31, 4294967292 }
  0x19   :  { %v1080_v36 = vsel %vm1079_vm2, %v2306_v28, 4294967292  ;;  %v1206_v37 = vsel %vm1205_vm3, %v1078_v30, 4  ;;  %v1110_v38 = vsel %vm1109_vm4, %v2321_v29, 4294967292  ;;  %v1112_v40 = vsel %vm1111_vm5, %v2322_v31, 4294967292 }
  0x1a   :  { %vm1207_vm6 = vcmp.lt.s32.totalorder %v1080_v36, 4  ;;  %v1333_v39 = vadd.s32 4, %v1206_v37  ;;  %vm1237_vm8 = vcmp.lt.s32.totalorder %v1110_v38, 4  ;;  %vm1239_vm9 = vcmp.lt.s32.totalorder %v1112_v40, 4  ;;  %1930 = vmatpush.bf16.msra.mxu0 %v2469_v35  ;;  %2473 = vmatpush.bf16.msra.mxu1 %v2469_v35 }
  0x1b   :  { %v1208_v41 = vsel %vm1207_vm6, %v1080_v36, 4  ;;  %v1238_v42 = vsel %vm1237_vm8, %v1110_v38, 4  ;;  %vm1141_vm10 = vcmp.gt.s32.totalorder %v2337_v32, 4294967292  ;;  %v1240_v45 = vsel %vm1239_vm9, %v1112_v40, 4  ;;  %2474 = vmatpush.bf16.msra.mxu2 %v2469_v35  ;;  %2475 = vmatpush.bf16.msra.mxu3 %v2469_v35 }
  0x1c   :  { %v1334_v43 = vadd.s32 4, %v1208_v41  ;;  %vm1397_vm11 = vcmp.eq.s32.totalorder %v2608_v15, %v1333_v39  ;;  %v1461_v44 = vadd.s32 9, %v1333_v39  ;;  %v1349_v46 = vadd.s32 4, %v1238_v42 }
  0x1d   :  { %v1350_v47 = vadd.s32 4, %v1240_v45  ;;  %v1142_v48 = vsel %vm1141_vm10, %v2337_v32, 4294967292  ;;  %vm1143_vm12 = vcmp.gt.s32.totalorder %v2338_v33, 4294967292  ;;  %v51_v0 = vadd.s32 16, %v2594_v1 }
  0x1e   :  { %vm1398_vm13 = vcmp.eq.s32.totalorder %v2608_v15, %v1334_v43  ;;  %v1462_v49 = vadd.s32 9, %v1334_v43  ;;  %vm1525_vm14 = vcmp.eq.s32.totalorder %v2608_v15, %v1461_v44  ;;  %v1144_v50 = vsel %vm1143_vm12, %v2338_v33, 4294967292 }
  0x1f   :  { %vm1589_vm15 = vmor %vm1397_vm11, %vm1525_vm14  ;;  %vm1413_vm0 = vcmp.eq.s32.totalorder %v2608_v15, %v1349_v46  ;;  %vm1414_vm1 = vcmp.eq.s32.totalorder %v2608_v15, %v1350_v47  ;;  %v1477_v51 = vadd.s32 9, %v1349_v46  ;;  %v1478_v52 = vadd.s32 9, %v1350_v47 }
  0x20   :  { %vm1526_vm2 = vcmp.eq.s32.totalorder %v2608_v15, %v1462_v49  ;;  %v2369_v54 = vsel %vm1589_vm15, 1.0, %v2568_v53  ;;  %vm1269_vm3 = vcmp.lt.s32.totalorder %v1142_v48, 4  ;;  %vm1271_vm4 = vcmp.lt.s32.totalorder %v1144_v50, 4 }
  0x21   :  { %vm1590_vm5 = vmor %vm1398_vm13, %vm1526_vm2  ;;  %vm1541_vm6 = vcmp.eq.s32.totalorder %v2608_v15, %v1477_v51  ;;  %vm1542_vm8 = vcmp.eq.s32.totalorder %v2608_v15, %v1478_v52  ;;  %v1270_v55 = vsel %vm1269_vm3, %v1142_v48, 4  ;;  %v1272_v56 = vsel %vm1271_vm4, %v1144_v50, 4 }
  0x22   :  { %v2370_v57 = vsel %vm1590_vm5, 1.0, %v2568_v53  ;;  %vm1605_vm9 = vmor %vm1413_vm0, %vm1541_vm6  ;;  %v1365_v58 = vadd.s32 4, %v1270_v55  ;;  %v1366_v59 = vadd.s32 4, %v1272_v56  ;;  %v2353_v6 = vadd.s32 4294967289, %v997_v60 }
  0x23   :  { %v1781_v61 = vpack.c.bf16 %v2370_v57, %v2369_v54  ;;  %vm1606_vm10 = vmor %vm1414_vm1, %vm1542_vm8  ;;  %v2385_v62 = vsel %vm1605_vm9, 1.0, %v2568_v53  ;;  %v2354_v7 = vadd.s32 4294967289, %v998_v63  ;;  %v52_v8 = vadd.s32 24, %v2594_v1 }
  0x24   :  { %v2386_v2 = vsel %vm1606_vm10, 1.0, %v2568_v53  ;;  %vm1429_vm11 = vcmp.eq.s32.totalorder %v2608_v15, %v1365_v58  ;;  %vm1430_vm12 = vcmp.eq.s32.totalorder %v2608_v15, %v1366_v59  ;;  %v1493_v3 = vadd.s32 9, %v1365_v58 }
  0x25   :  { %2437 = vmatmul.msk.bf16.vlgmr.msra.gmra.mxu0 %vm1822_vm7, %v1781_v61  ;;  %v1789_v4 = vpack.c.bf16 %v2386_v2, %v2385_v62  ;;  %v1494_v5 = vadd.s32 9, %v1366_v59  ;;  %v199_v9 = vand.u32 7, %v51_v0  ;;  %v67_v10 = vadd.s32 144, %v2594_v1 }
  0x26   :  { %vm1557_vm13 = vcmp.eq.s32.totalorder %v2608_v15, %v1493_v3  ;;  %vm1173_vm0 = vcmp.gt.s32.totalorder %v2353_v6, 4294967292  ;;  %vm1175_vm1 = vcmp.gt.s32.totalorder %v2354_v7, 4294967292  ;;  %v68_v11 = vadd.s32 152, %v2594_v1 }
  0x27   :  { %2445 = vmatmul.msk.bf16.vlgmr.msra.gmra.mxu1 %vm1822_vm7, %v1789_v4  ;;  %vm1558_vm14 = vcmp.eq.s32.totalorder %v2608_v15, %v1494_v5  ;;  %vm1621_vm15 = vmor %vm1429_vm11, %vm1557_vm13  ;;  %v1174_v13 = vsel %vm1173_vm0, %v2353_v6, 4294967292  ;;  %v1176_v14 = vsel %vm1175_vm1, %v2354_v7, 4294967292  ;;  %v206_v16 = vand.u32 7, %v52_v8 }
  0x28   :  { %vm1622_vm2 = vmor %vm1430_vm12, %vm1558_vm14  ;;  %v2401_v12 = vsel %vm1621_vm15, 1.0, %v2568_v53  ;;  %vm1301_vm3 = vcmp.lt.s32.totalorder %v1174_v13, 4  ;;  %vm1303_vm4 = vcmp.lt.s32.totalorder %v1176_v14, 4  ;;  %v951_v18 = vmul.u32 2, %v199_v9 }
  0x29   :  { %v2402_v17 = vsel %vm1622_vm2, 1.0, %v2568_v53  ;;  %v1302_v20 = vsel %vm1301_vm3, %v1174_v13, 4  ;;  %v1304_v21 = vsel %vm1303_vm4, %v1176_v14, 4  ;;  %v952_v22 = vmul.u32 2, %v206_v16 }
  0x2a   :  { %v1797_v19 = vpack.c.bf16 %v2402_v17, %v2401_v12  ;;  %v1381_v23 = vadd.s32 4, %v1302_v20  ;;  %v1382_v24 = vadd.s32 4, %v1304_v21  ;;  %v2307_v25 = vadd.s32 4294967289, %v951_v18 }
  0x2b   :  { %v311_v26 = vand.u32 7, %v67_v10  ;;  %v2308_v27 = vadd.s32 4294967289, %v952_v22  ;;  %v318_v28 = vand.u32 7, %v68_v11  ;;  %v83_v29 = vadd.s32 272, %v2594_v1 }
  0x2c   :  { %2453 = vmatmul.msk.bf16.vlgmr.msra.gmra.mxu2 %vm1822_vm7, %v1797_v19  ;;  %v84_v30 = vadd.s32 280, %v2594_v1  ;;  %vm1445_vm5 = vcmp.eq.s32.totalorder %v2608_v15, %v1381_v23  ;;  %vm1446_vm6 = vcmp.eq.s32.totalorder %v2608_v15, %v1382_v24  ;;  %v1509_v31 = vadd.s32 9, %v1381_v23 }
  0x2d   :  { %v1510_v32 = vadd.s32 9, %v1382_v24  ;;  %vm1081_vm8 = vcmp.gt.s32.totalorder %v2307_v25, 4294967292  ;;  %vm1083_vm9 = vcmp.gt.s32.totalorder %v2308_v27, 4294967292  ;;  %v967_v33 = vmul.u32 2, %v311_v26 }
  0x2e   :  { %v968_v34 = vmul.u32 2, %v318_v28  ;;  %vm1573_vm10 = vcmp.eq.s32.totalorder %v2608_v15, %v1509_v31  ;;  %v1082_v35 = vsel %vm1081_vm8, %v2307_v25, 4294967292  ;;  %v1084_v36 = vsel %vm1083_vm9, %v2308_v27, 4294967292 }
  0x2f   :  { %vm1574_vm11 = vcmp.eq.s32.totalorder %v2608_v15, %v1510_v32  ;;  %vm1637_vm12 = vmor %vm1445_vm5, %vm1573_vm10  ;;  %vm1209_vm13 = vcmp.lt.s32.totalorder %v1082_v35, 4  ;;  %vm1211_vm14 = vcmp.lt.s32.totalorder %v1084_v36, 4  ;;  %v2323_v37 = vadd.s32 4294967289, %v967_v33 }
  0x30   :  { %v2324_v38 = vadd.s32 4294967289, %v968_v34  ;;  %vm1638_vm15 = vmor %vm1446_vm6, %vm1574_vm11  ;;  %v2417_v39 = vsel %vm1637_vm12, 1.0, %v2568_v53  ;;  %v1210_v40 = vsel %vm1209_vm13, %v1082_v35, 4  ;;  %v1212_v41 = vsel %vm1211_vm14, %v1084_v36, 4 }
  0x31   :  { %v423_v42 = vand.u32 7, %v83_v29  ;;  %v2418_v43 = vsel %vm1638_vm15, 1.0, %v2568_v53  ;;  %v1335_v44 = vadd.s32 4, %v1210_v40  ;;  %v1336_v45 = vadd.s32 4, %v1212_v41 }
  0x32   :  { %vm1113_vm0 = vcmp.gt.s32.totalorder %v2323_v37, 4294967292  ;;  %v1805_v46 = vpack.c.bf16 %v2418_v43, %v2417_v39  ;;  %vm1115_vm1 = vcmp.gt.s32.totalorder %v2324_v38, 4294967292  ;;  %v430_v48 = vand.u32 7, %v84_v30 }
  0x33   :  { %v1114_v47 = vsel %vm1113_vm0, %v2323_v37, 4294967292  ;;  %vm1399_vm2 = vcmp.eq.s32.totalorder %v2608_v15, %v1335_v44  ;;  %vm1400_vm3 = vcmp.eq.s32.totalorder %v2608_v15, %v1336_v45  ;;  %v1463_v49 = vadd.s32 9, %v1335_v44 }
  0x34   :  { %v1464_v50 = vadd.s32 9, %v1336_v45  ;;  %2461 = vmatmul.msk.bf16.vlgmr.msra.gmra.mxu3 %vm1822_vm7, %v1805_v46  ;;  %v1116_v51 = vsel %vm1115_vm1, %v2324_v38, 4294967292  ;;  %vm1241_vm4 = vcmp.lt.s32.totalorder %v1114_v47, 4  ;;  %v983_v52 = vmul.u32 2, %v423_v42 }
  0x35   :  { %v984_v54 = vmul.u32 2, %v430_v48  ;;  %vm1527_vm5 = vcmp.eq.s32.totalorder %v2608_v15, %v1463_v49  ;;  %v1242_v55 = vsel %vm1241_vm4, %v1114_v47, 4  ;;  %vm1243_vm8 = vcmp.lt.s32.totalorder %v1116_v51, 4 }
  0x36   :  { %vm1528_vm6 = vcmp.eq.s32.totalorder %v2608_v15, %v1464_v50  ;;  %vm1591_vm9 = vmor %vm1399_vm2, %vm1527_vm5  ;;  %v1244_v56 = vsel %vm1243_vm8, %v1116_v51, 4  ;;  %v1351_v57 = vadd.s32 4, %v1242_v55  ;;  %v2339_v58 = vadd.s32 4294967289, %v983_v52 }
  0x37   :  { %v2340_v59 = vadd.s32 4294967289, %v984_v54  ;;  %vm1592_vm10 = vmor %vm1400_vm3, %vm1528_vm6  ;;  %v2371_v60 = vsel %vm1591_vm9, 1.0, %v2568_v53  ;;  %v1352_v61 = vadd.s32 4, %v1244_v56  ;;  %v99_v62 = vadd.s32 400, %v2594_v1 }
  0x38   :  { %v100_v63 = vadd.s32 408, %v2594_v1  ;;  %v2372_v0 = vsel %vm1592_vm10, 1.0, %v2568_v53  ;;  %vm1415_vm11 = vcmp.eq.s32.totalorder %v2608_v15, %v1351_v57  ;;  %v1479_v2 = vadd.s32 9, %v1351_v57 }
  0x39   :  { %vm1145_vm12 = vcmp.gt.s32.totalorder %v2339_v58, 4294967292  ;;  %v1782_v3 = vpack.c.bf16 %v2372_v0, %v2371_v60  ;;  %vm1416_vm13 = vcmp.eq.s32.totalorder %v2608_v15, %v1352_v61  ;;  %v1480_v4 = vadd.s32 9, %v1352_v61 }
  0x3a   :  { %v1146_v5 = vsel %vm1145_vm12, %v2339_v58, 4294967292  ;;  %vm1543_vm14 = vcmp.eq.s32.totalorder %v2608_v15, %v1479_v2  ;;  %vm1147_vm15 = vcmp.gt.s32.totalorder %v2340_v59, 4294967292  ;;  %v535_v6 = vand.u32 7, %v99_v62 }
  0x3b   :  { %vm1273_vm0 = vcmp.lt.s32.totalorder %v1146_v5, 4  ;;  %2438 = vmatmul.msk.bf16.gmra.mxu0 %vm1822_vm7, %v1782_v3  ;;  %vm1544_vm1 = vcmp.eq.s32.totalorder %v2608_v15, %v1480_v4  ;;  %vm1607_vm2 = vmor %vm1415_vm11, %vm1543_vm14  ;;  %v1148_v7 = vsel %vm1147_vm15, %v2340_v59, 4294967292  ;;  %v542_v9 = vand.u32 7, %v100_v63 }
  0x3c   :  { %v1274_v8 = vsel %vm1273_vm0, %v1146_v5, 4  ;;  %vm1608_vm3 = vmor %vm1416_vm13, %vm1544_vm1  ;;  %v2387_v10 = vsel %vm1607_vm2, 1.0, %v2568_v53  ;;  %vm1275_vm4 = vcmp.lt.s32.totalorder %v1148_v7, 4  ;;  %v999_v12 = vmul.u32 2, %v535_v6 }
  0x3d   :  { %v1367_v11 = vadd.s32 4, %v1274_v8  ;;  %v2388_v13 = vsel %vm1608_vm3, 1.0, %v2568_v53  ;;  %v1276_v14 = vsel %vm1275_vm4, %v1148_v7, 4  ;;  %v1000_v16 = vmul.u32 2, %v542_v9 }
  0x3e   :  { %v53_v17 = vadd.s32 32, %v2594_v1  ;;  %v1790_v18 = vpack.c.bf16 %v2388_v13, %v2387_v10  ;;  %v1368_v19 = vadd.s32 4, %v1276_v14  ;;  %v2355_v21 = vadd.s32 4294967289, %v999_v12 }
  0x3f   :  { %vm1431_vm5 = vcmp.eq.s32.totalorder %v2608_v15, %v1367_v11  ;;  %v1495_v20 = vadd.s32 9, %v1367_v11  ;;  %v2356_v22 = vadd.s32 4294967289, %v1000_v16  ;;  %v54_v23 = vadd.s32 40, %v2594_v1 }
  0x40   :  { %v213_v24 = vand.u32 7, %v53_v17  ;;  %2446 = vmatmul.msk.bf16.gmra.mxu1 %vm1822_vm7, %v1790_v18  ;;  %vm1432_vm6 = vcmp.eq.s32.totalorder %v2608_v15, %v1368_v19  ;;  %v1496_v25 = vadd.s32 9, %v1368_v19  ;;  %v69_v26 = vadd.s32 160, %v2594_v1 }
  0x41   :  { %vm1559_vm8 = vcmp.eq.s32.totalorder %v2608_v15, %v1495_v20  ;;  %vm1177_vm10 = vcmp.gt.s32.totalorder %v2355_v21, 4294967292  ;;  %vm1179_vm11 = vcmp.gt.s32.totalorder %v2356_v22, 4294967292  ;;  %v220_v27 = vand.u32 7, %v54_v23 }
  0x42   :  { %vm1623_vm9 = vmor %vm1431_vm5, %vm1559_vm8  ;;  %v953_v28 = vmul.u32 2, %v213_v24  ;;  %vm1560_vm12 = vcmp.eq.s32.totalorder %v2608_v15, %v1496_v25  ;;  %v1178_v30 = vsel %vm1177_vm10, %v2355_v21, 4294967292  ;;  %v1180_v31 = vsel %vm1179_vm11, %v2356_v22, 4294967292 }
  0x43   :  { %v2403_v29 = vsel %vm1623_vm9, 1.0, %v2568_v53  ;;  %vm1624_vm13 = vmor %vm1432_vm6, %vm1560_vm12  ;;  %vm1305_vm14 = vcmp.lt.s32.totalorder %v1178_v30, 4  ;;  %vm1307_vm15 = vcmp.lt.s32.totalorder %v1180_v31, 4  ;;  %v954_v32 = vmul.u32 2, %v220_v27 }
  0x44   :  { %v2309_v33 = vadd.s32 4294967289, %v953_v28  ;;  %v2404_v34 = vsel %vm1624_vm13, 1.0, %v2568_v53  ;;  %v1306_v35 = vsel %vm1305_vm14, %v1178_v30, 4  ;;  %v1308_v36 = vsel %vm1307_vm15, %v1180_v31, 4 }
  0x45   :  { %v70_v37 = vadd.s32 168, %v2594_v1  ;;  %v1798_v38 = vpack.c.bf16 %v2404_v34, %v2403_v29  ;;  %v1383_v39 = vadd.s32 4, %v1306_v35  ;;  %v1384_v40 = vadd.s32 4, %v1308_v36 }
  0x46   :  { %v2310_v41 = vadd.s32 4294967289, %v954_v32  ;;  %vm1085_vm0 = vcmp.gt.s32.totalorder %v2309_v33, 4294967292  ;;  %v325_v42 = vand.u32 7, %v69_v26  ;;  %v85_v44 = vadd.s32 288, %v2594_v1 }
  0x47   :  { %v332_v43 = vand.u32 7, %v70_v37  ;;  %2454 = vmatmul.msk.bf16.gmra.mxu2 %vm1822_vm7, %v1798_v38  ;;  %vm1447_vm1 = vcmp.eq.s32.totalorder %v2608_v15, %v1383_v39  ;;  %vm1448_vm2 = vcmp.eq.s32.totalorder %v2608_v15, %v1384_v40  ;;  %v1511_v45 = vadd.s32 9, %v1383_v39 }
  0x48   :  { %v1512_v46 = vadd.s32 9, %v1384_v40  ;;  %v1086_v47 = vsel %vm1085_vm0, %v2309_v33, 4294967292  ;;  %vm1087_vm3 = vcmp.gt.s32.totalorder %v2310_v41, 4294967292  ;;  %v969_v48 = vmul.u32 2, %v325_v42 }
  0x49   :  { %v970_v49 = vmul.u32 2, %v332_v43  ;;  %vm1575_vm4 = vcmp.eq.s32.totalorder %v2608_v15, %v1511_v45  ;;  %v1088_v50 = vsel %vm1087_vm3, %v2310_v41, 4294967292  ;;  %vm1213_vm6 = vcmp.lt.s32.totalorder %v1086_v47, 4 }
  0x4a   :  { %vm1576_vm5 = vcmp.eq.s32.totalorder %v2608_v15, %v1512_v46  ;;  %vm1639_vm8 = vmor %vm1447_vm1, %vm1575_vm4  ;;  %v1214_v51 = vsel %vm1213_vm6, %v1086_v47, 4  ;;  %vm1215_vm9 = vcmp.lt.s32.totalorder %v1088_v50, 4  ;;  %v2325_v52 = vadd.s32 4294967289, %v969_v48 }
  0x4b   :  { %v2326_v54 = vadd.s32 4294967289, %v970_v49  ;;  %vm1640_vm10 = vmor %vm1448_vm2, %vm1576_vm5  ;;  %v2419_v55 = vsel %vm1639_vm8, 1.0, %v2568_v53  ;;  %v1216_v56 = vsel %vm1215_vm9, %v1088_v50, 4  ;;  %v1337_v57 = vadd.s32 4, %v1214_v51 }
  0x4c   :  { %v86_v58 = vadd.s32 296, %v2594_v1  ;;  %v2420_v59 = vsel %vm1640_vm10, 1.0, %v2568_v53  ;;  %v1338_v60 = vadd.s32 4, %v1216_v56  ;;  %vm1117_vm11 = vcmp.gt.s32.totalorder %v2325_v52, 4294967292 }
  0x4d   :  { %vm1119_vm12 = vcmp.gt.s32.totalorder %v2326_v54, 4294967292  ;;  %v1806_v61 = vpack.c.bf16 %v2420_v59, %v2419_v55  ;;  %vm1401_vm13 = vcmp.eq.s32.totalorder %v2608_v15, %v1337_v57  ;;  %v1465_v62 = vadd.s32 9, %v1337_v57 }
  0x4e   :  { %v1118_v63 = vsel %vm1117_vm11, %v2325_v52, 4294967292  ;;  %vm1402_vm14 = vcmp.eq.s32.totalorder %v2608_v15, %v1338_v60  ;;  %v1466_v0 = vadd.s32 9, %v1338_v60  ;;  %v1120_v2 = vsel %vm1119_vm12, %v2326_v54, 4294967292 }
  0x4f   :  { %vm1245_vm15 = vcmp.lt.s32.totalorder %v1118_v63, 4  ;;  %2462 = vmatmul.msk.bf16.gmra.mxu3 %vm1822_vm7, %v1806_v61  ;;  %vm1529_vm0 = vcmp.eq.s32.totalorder %v2608_v15, %v1465_v62  ;;  %vm1247_vm1 = vcmp.lt.s32.totalorder %v1120_v2, 4  ;;  %v437_v4 = vand.u32 7, %v85_v44 }
  0x50   :  { %v1246_v3 = vsel %vm1245_vm15, %v1118_v63, 4  ;;  %vm1530_vm2 = vcmp.eq.s32.totalorder %v2608_v15, %v1466_v0  ;;  %vm1593_vm3 = vmor %vm1401_vm13, %vm1529_vm0  ;;  %v1248_v5 = vsel %vm1247_vm1, %v1120_v2, 4  ;;  %v444_v7 = vand.u32 7, %v86_v58 }
  0x51   :  { %v1353_v6 = vadd.s32 4, %v1246_v3  ;;  %vm1594_vm4 = vmor %vm1402_vm14, %vm1530_vm2  ;;  %v2373_v8 = vsel %vm1593_vm3, 1.0, %v2568_v53  ;;  %v1354_v9 = vadd.s32 4, %v1248_v5  ;;  %v985_v10 = vmul.u32 2, %v437_v4 }
  0x52   :  { %v101_v11 = vadd.s32 416, %v2594_v1  ;;  %v2374_v12 = vsel %vm1594_vm4, 1.0, %v2568_v53  ;;  %v986_v14 = vmul.u32 2, %v444_v7  ;;  %v102_v20 = vadd.s32 424, %v2594_v1 }
  0x53   :  { %vm1417_vm5 = vcmp.eq.s32.totalorder %v2608_v15, %v1353_v6  ;;  %v1481_v13 = vadd.s32 9, %v1353_v6  ;;  %v1783_v16 = vpack.c.bf16 %v2374_v12, %v2373_v8  ;;  %vm1418_vm6 = vcmp.eq.s32.totalorder %v2608_v15, %v1354_v9 }
  0x54   :  { %v1482_v17 = vadd.s32 9, %v1354_v9  ;;  %v2341_v18 = vadd.s32 4294967289, %v985_v10  ;;  %v2342_v19 = vadd.s32 4294967289, %v986_v14  ;;  %v549_v21 = vand.u32 7, %v101_v11 }
  0x55   :  { %vm1545_vm8 = vcmp.eq.s32.totalorder %v2608_v15, %v1481_v13  ;;  %2439 = vmatmul.msk.bf16.gmra.mxu0 %vm1822_vm7, %v1783_v16  ;;  %v55_v22 = vadd.s32 48, %v2594_v1  ;;  %v56_v23 = vadd.s32 56, %v2594_v1  ;;  %v556_v26 = vand.u32 7, %v102_v20 }
  0x56   :  { %vm1546_vm9 = vcmp.eq.s32.totalorder %v2608_v15, %v1482_v17  ;;  %vm1609_vm10 = vmor %vm1417_vm5, %vm1545_vm8  ;;  %vm1149_vm11 = vcmp.gt.s32.totalorder %v2341_v18, 4294967292  ;;  %vm1151_vm13 = vcmp.gt.s32.totalorder %v2342_v19, 4294967292  ;;  %v1001_v29 = vmul.u32 2, %v549_v21 }
  0x57   :  { %vm1610_vm12 = vmor %vm1418_vm6, %vm1546_vm9  ;;  %v2389_v24 = vsel %vm1609_vm10, 1.0, %v2568_v53  ;;  %v1150_v25 = vsel %vm1149_vm11, %v2341_v18, 4294967292  ;;  %v1152_v28 = vsel %vm1151_vm13, %v2342_v19, 4294967292  ;;  %v1002_v32 = vmul.u32 2, %v556_v26 }
  0x58   :  { %v2390_v27 = vsel %vm1610_vm12, 1.0, %v2568_v53  ;;  %vm1277_vm14 = vcmp.lt.s32.totalorder %v1150_v25, 4  ;;  %vm1279_vm15 = vcmp.lt.s32.totalorder %v1152_v28, 4  ;;  %v2357_v35 = vadd.s32 4294967289, %v1001_v29 }
  0x59   :  { %v1791_v30 = vpack.c.bf16 %v2390_v27, %v2389_v24  ;;  %v1278_v31 = vsel %vm1277_vm14, %v1150_v25, 4  ;;  %v1280_v33 = vsel %vm1279_vm15, %v1152_v28, 4  ;;  %v227_v36 = vand.u32 7, %v55_v22 }
  0x5a   :  { %v1369_v34 = vadd.s32 4, %v1278_v31  ;;  %v1370_v37 = vadd.s32 4, %v1280_v33  ;;  %v2358_v38 = vadd.s32 4294967289, %v1002_v32  ;;  %v234_v39 = vand.u32 7, %v56_v23 }
  0x5b   :  { %2447 = vmatmul.msk.bf16.gmra.mxu1 %vm1822_vm7, %v1791_v30  ;;  %v71_v40 = vadd.s32 176, %v2594_v1  ;;  %vm1181_vm1 = vcmp.gt.s32.totalorder %v2357_v35, 4294967292  ;;  %v955_v42 = vmul.u32 2, %v227_v36  ;;  %v72_v56 = vadd.s32 184, %v2594_v1 }
  0x5c   :  { %vm1433_vm0 = vcmp.eq.s32.totalorder %v2608_v15, %v1369_v34  ;;  %v1497_v41 = vadd.s32 9, %v1369_v34  ;;  %vm1434_vm2 = vcmp.eq.s32.totalorder %v2608_v15, %v1370_v37  ;;  %v1498_v43 = vadd.s32 9, %v1370_v37 }
  0x5d   :  { %v1182_v44 = vsel %vm1181_vm1, %v2357_v35, 4294967292  ;;  %vm1183_vm3 = vcmp.gt.s32.totalorder %v2358_v38, 4294967292  ;;  %v956_v46 = vmul.u32 2, %v234_v39  ;;  %v2311_v48 = vadd.s32 4294967289, %v955_v42 }
  0x5e   :  { %vm1561_vm4 = vcmp.eq.s32.totalorder %v2608_v15, %v1497_v41  ;;  %v1184_v45 = vsel %vm1183_vm3, %v2358_v38, 4294967292  ;;  %vm1309_vm5 = vcmp.lt.s32.totalorder %v1182_v44, 4  ;;  %vm1562_vm6 = vcmp.eq.s32.totalorder %v2608_v15, %v1498_v43 }
  0x5f   :  { %vm1625_vm8 = vmor %vm1433_vm0, %vm1561_vm4  ;;  %v1310_v47 = vsel %vm1309_vm5, %v1182_v44, 4  ;;  %vm1311_vm9 = vcmp.lt.s32.totalorder %v1184_v45, 4  ;;  %v2312_v52 = vadd.s32 4294967289, %v956_v46  ;;  %vm1089_vm11 = vcmp.gt.s32.totalorder %v2311_v48, 4294967292 }
  0x60   :  { %vm1626_vm10 = vmor %vm1434_vm2, %vm1562_vm6  ;;  %v2405_v49 = vsel %vm1625_vm8, 1.0, %v2568_v53  ;;  %v1312_v50 = vsel %vm1311_vm9, %v1184_v45, 4  ;;  %v1385_v51 = vadd.s32 4, %v1310_v47  ;;  %v1090_v59 = vsel %vm1089_vm11, %v2311_v48, 4294967292 }
  0x61   :  { %v2406_v54 = vsel %vm1626_vm10, 1.0, %v2568_v53  ;;  %v1386_v55 = vadd.s32 4, %v1312_v50  ;;  %vm1091_vm14 = vcmp.gt.s32.totalorder %v2312_v52, 4294967292  ;;  %vm1217_vm15 = vcmp.lt.s32.totalorder %v1090_v59, 4 }
  0x62   :  { %v1799_v57 = vpack.c.bf16 %v2406_v54, %v2405_v49  ;;  %vm1449_vm12 = vcmp.eq.s32.totalorder %v2608_v15, %v1385_v51  ;;  %v1513_v58 = vadd.s32 9, %v1385_v51  ;;  %v1092_v61 = vsel %vm1091_vm14, %v2312_v52, 4294967292 }
  0x63   :  { %vm1450_vm13 = vcmp.eq.s32.totalorder %v2608_v15, %v1386_v55  ;;  %v1514_v60 = vadd.s32 9, %v1386_v55  ;;  %v1218_v62 = vsel %vm1217_vm15, %v1090_v59, 4  ;;  %v339_v63 = vand.u32 7, %v71_v40 }
  0x64   :  { %2455 = vmatmul.msk.bf16.gmra.mxu2 %vm1822_vm7, %v1799_v57  ;;  %vm1577_vm0 = vcmp.eq.s32.totalorder %v2608_v15, %v1513_v58  ;;  %vm1219_vm3 = vcmp.lt.s32.totalorder %v1092_v61, 4  ;;  %v1339_v0 = vadd.s32 4, %v1218_v62  ;;  %v346_v2 = vand.u32 7, %v72_v56 }
  0x65   :  { %vm1578_vm1 = vcmp.eq.s32.totalorder %v2608_v15, %v1514_v60  ;;  %vm1641_vm2 = vmor %vm1449_vm12, %vm1577_vm0  ;;  %v1220_v4 = vsel %vm1219_vm3, %v1092_v61, 4  ;;  %v971_v5 = vmul.u32 2, %v339_v63  ;;  %v87_v6 = vadd.s32 304, %v2594_v1 }
  0x66   :  { %vm1642_vm4 = vmor %vm1450_vm13, %vm1578_vm1  ;;  %v2421_v3 = vsel %vm1641_vm2, 1.0, %v2568_v53  ;;  %v1340_v8 = vadd.s32 4, %v1220_v4  ;;  %vm1403_vm5 = vcmp.eq.s32.totalorder %v2608_v15, %v1339_v0  ;;  %v1467_v9 = vadd.s32 9, %v1339_v0 }
  0x67   :  { %v2422_v7 = vsel %vm1642_vm4, 1.0, %v2568_v53  ;;  %v972_v11 = vmul.u32 2, %v346_v2  ;;  %v2327_v12 = vadd.s32 4294967289, %v971_v5  ;;  %v88_v13 = vadd.s32 312, %v2594_v1 }
  0x68   :  { %v1807_v10 = vpack.c.bf16 %v2422_v7, %v2421_v3  ;;  %vm1404_vm6 = vcmp.eq.s32.totalorder %v2608_v15, %v1340_v8  ;;  %v1468_v14 = vadd.s32 9, %v1340_v8  ;;  %vm1531_vm8 = vcmp.eq.s32.totalorder %v2608_v15, %v1467_v9 }
  0x69   :  { %v451_v16 = vand.u32 7, %v87_v6  ;;  %vm1595_vm9 = vmor %vm1403_vm5, %vm1531_vm8  ;;  %v2328_v17 = vadd.s32 4294967289, %v972_v11  ;;  %vm1121_vm10 = vcmp.gt.s32.totalorder %v2327_v12, 4294967292  ;;  %v458_v18 = vand.u32 7, %v88_v13 }
  0x6a   :  { %2463 = vmatmul.msk.bf16.gmra.mxu3 %vm1822_vm7, %v1807_v10  ;;  %v103_v19 = vadd.s32 432, %v2594_v1  ;;  %vm1532_vm11 = vcmp.eq.s32.totalorder %v2608_v15, %v1468_v14  ;;  %v2375_v20 = vsel %vm1595_vm9, 1.0, %v2568_v53  ;;  %v1122_v21 = vsel %vm1121_vm10, %v2327_v12, 4294967292 }
  0x6b   :  { %v987_v22 = vmul.u32 2, %v451_v16  ;;  %vm1596_vm12 = vmor %vm1404_vm6, %vm1532_vm11  ;;  %vm1123_vm13 = vcmp.gt.s32.totalorder %v2328_v17, 4294967292  ;;  %vm1249_vm14 = vcmp.lt.s32.totalorder %v1122_v21, 4  ;;  %v988_v23 = vmul.u32 2, %v458_v18 }
  0x6c   :  { %v104_v24 = vadd.s32 440, %v2594_v1  ;;  %v2376_v25 = vsel %vm1596_vm12, 1.0, %v2568_v53  ;;  %v1124_v26 = vsel %vm1123_vm13, %v2328_v17, 4294967292  ;;  %v1250_v27 = vsel %vm1249_vm14, %v1122_v21, 4 }
  0x6d   :  { %v2343_v28 = vadd.s32 4294967289, %v987_v22  ;;  %v1784_v29 = vpack.c.bf16 %v2376_v25, %v2375_v20  ;;  %vm1251_vm15 = vcmp.lt.s32.totalorder %v1124_v26, 4  ;;  %v1355_v30 = vadd.s32 4, %v1250_v27 }
  0x6e   :  { %v2344_v31 = vadd.s32 4294967289, %v988_v23  ;;  %v1252_v32 = vsel %vm1251_vm15, %v1124_v26, 4  ;;  %v563_v33 = vand.u32 7, %v103_v19  ;;  %v570_v34 = vand.u32 7, %v104_v24 }
  0x6f   :  { %vm1153_vm0 = vcmp.gt.s32.totalorder %v2343_v28, 4294967292  ;;  %2440 = vmatmul.msk.bf16.gmra.mxu0 %vm1822_vm7, %v1784_v29  ;;  %v1356_v35 = vadd.s32 4, %v1252_v32  ;;  %vm1419_vm1 = vcmp.eq.s32.totalorder %v2608_v15, %v1355_v30  ;;  %v1483_v36 = vadd.s32 9, %v1355_v30 }
  0x70   :  { %v1154_v37 = vsel %vm1153_vm0, %v2343_v28, 4294967292  ;;  %vm1155_vm2 = vcmp.gt.s32.totalorder %v2344_v31, 4294967292  ;;  %v1003_v38 = vmul.u32 2, %v563_v33  ;;  %v1004_v39 = vmul.u32 2, %v570_v34 }
  0x71   :  { %vm1281_vm3 = vcmp.lt.s32.totalorder %v1154_v37, 4  ;;  %vm1420_vm4 = vcmp.eq.s32.totalorder %v2608_v15, %v1356_v35  ;;  %v1484_v40 = vadd.s32 9, %v1356_v35  ;;  %vm1547_vm5 = vcmp.eq.s32.totalorder %v2608_v15, %v1483_v36 }
  0x72   :  { %v1156_v41 = vsel %vm1155_vm2, %v2344_v31, 4294967292  ;;  %vm1611_vm6 = vmor %vm1419_vm1, %vm1547_vm5  ;;  %v1282_v42 = vsel %vm1281_vm3, %v1154_v37, 4  ;;  %v2359_v43 = vadd.s32 4294967289, %v1003_v38  ;;  %v2360_v44 = vadd.s32 4294967289, %v1004_v39 }
  0x73   :  { %vm1283_vm8 = vcmp.lt.s32.totalorder %v1156_v41, 4  ;;  %vm1548_vm9 = vcmp.eq.s32.totalorder %v2608_v15, %v1484_v40  ;;  %v2391_v45 = vsel %vm1611_vm6, 1.0, %v2568_v53  ;;  %v1371_v47 = vadd.s32 4, %v1282_v42 }
  0x74   :  { %v1284_v46 = vsel %vm1283_vm8, %v1156_v41, 4  ;;  %vm1612_vm10 = vmor %vm1420_vm4, %vm1548_vm9  ;;  %vm1185_vm11 = vcmp.gt.s32.totalorder %v2359_v43, 4294967292  ;;  %vm1187_vm12 = vcmp.gt.s32.totalorder %v2360_v44, 4294967292  ;;  %v57_v49 = vadd.s32 64, %v2594_v1 }
  0x75   :  { %v1372_v48 = vadd.s32 4, %v1284_v46  ;;  %v2392_v50 = vsel %vm1612_vm10, 1.0, %v2568_v53  ;;  %vm1435_vm13 = vcmp.eq.s32.totalorder %v2608_v15, %v1371_v47  ;;  %v1499_v51 = vadd.s32 9, %v1371_v47 }
  0x76   :  { %v1186_v52 = vsel %vm1185_vm11, %v2359_v43, 4294967292  ;;  %v1792_v54 = vpack.c.bf16 %v2392_v50, %v2391_v45  ;;  %v1188_v56 = vsel %vm1187_vm12, %v2360_v44, 4294967292  ;;  %v58_v57 = vadd.s32 72, %v2594_v1 }
  0x77   :  { %vm1436_vm14 = vcmp.eq.s32.totalorder %v2608_v15, %v1372_v48  ;;  %v1500_v55 = vadd.s32 9, %v1372_v48  ;;  %vm1563_vm15 = vcmp.eq.s32.totalorder %v2608_v15, %v1499_v51  ;;  %vm1313_vm0 = vcmp.lt.s32.totalorder %v1186_v52, 4 }
  0x78   :  { %vm1315_vm1 = vcmp.lt.s32.totalorder %v1188_v56, 4  ;;  %2448 = vmatmul.msk.bf16.gmra.mxu1 %vm1822_vm7, %v1792_v54  ;;  %vm1627_vm3 = vmor %vm1435_vm13, %vm1563_vm15  ;;  %v1314_v58 = vsel %vm1313_vm0, %v1186_v52, 4  ;;  %v241_v60 = vand.u32 7, %v57_v49  ;;  %v248_v0 = vand.u32 7, %v58_v57 }
  0x79   :  { %vm1564_vm2 = vcmp.eq.s32.totalorder %v2608_v15, %v1500_v55  ;;  %v1316_v59 = vsel %vm1315_vm1, %v1188_v56, 4  ;;  %v2407_v61 = vsel %vm1627_vm3, 1.0, %v2568_v53  ;;  %v1387_v62 = vadd.s32 4, %v1314_v58 }
  0x7a   :  { %vm1628_vm4 = vmor %vm1436_vm14, %vm1564_vm2  ;;  %v1388_v63 = vadd.s32 4, %v1316_v59  ;;  %v957_v3 = vmul.u32 2, %v241_v60  ;;  %v73_v4 = vadd.s32 192, %v2594_v1  ;;  %v74_v5 = vadd.s32 200, %v2594_v1 }
  0x7b   :  { %v2408_v2 = vsel %vm1628_vm4, 1.0, %v2568_v53  ;;  %vm1451_vm5 = vcmp.eq.s32.totalorder %v2608_v15, %v1387_v62  ;;  %v1515_v7 = vadd.s32 9, %v1387_v62  ;;  %v958_v9 = vmul.u32 2, %v248_v0 }
  0x7c   :  { %v1800_v6 = vpack.c.bf16 %v2408_v2, %v2407_v61  ;;  %vm1452_vm6 = vcmp.eq.s32.totalorder %v2608_v15, %v1388_v63  ;;  %v1516_v8 = vadd.s32 9, %v1388_v63  ;;  %v2313_v10 = vadd.s32 4294967289, %v957_v3 }
  0x7d   :  { %v353_v11 = vand.u32 7, %v73_v4  ;;  %vm1579_vm8 = vcmp.eq.s32.totalorder %v2608_v15, %v1515_v7  ;;  %v360_v12 = vand.u32 7, %v74_v5  ;;  %v89_v13 = vadd.s32 320, %v2594_v1 }
  0x7e   :  { %2456 = vmatmul.msk.bf16.gmra.mxu2 %vm1822_vm7, %v1800_v6  ;;  %v90_v14 = vadd.s32 328, %v2594_v1  ;;  %vm1580_vm9 = vcmp.eq.s32.totalorder %v2608_v15, %v1516_v8  ;;  %vm1643_vm10 = vmor %vm1451_vm5, %vm1579_vm8  ;;  %v2314_v16 = vadd.s32 4294967289, %v958_v9  ;;  %vm1093_vm11 = vcmp.gt.s32.totalorder %v2313_v10, 4294967292 }
  0x7f   :  { %v973_v17 = vmul.u32 2, %v353_v11  ;;  %vm1644_vm12 = vmor %vm1452_vm6, %vm1580_vm9  ;;  %v2423_v18 = vsel %vm1643_vm10, 1.0, %v2568_v53  ;;  %v1094_v19 = vsel %vm1093_vm11, %v2313_v10, 4294967292  ;;  %v974_v20 = vmul.u32 2, %v360_v12 }
  0x80   :  { %v465_v21 = vand.u32 7, %v89_v13  ;;  %v2424_v22 = vsel %vm1644_vm12, 1.0, %v2568_v53  ;;  %vm1095_vm13 = vcmp.gt.s32.totalorder %v2314_v16, 4294967292  ;;  %vm1221_vm14 = vcmp.lt.s32.totalorder %v1094_v19, 4 }
  0x81   :  { %v2329_v23 = vadd.s32 4294967289, %v973_v17  ;;  %v1808_v24 = vpack.c.bf16 %v2424_v22, %v2423_v18  ;;  %v1096_v25 = vsel %vm1095_vm13, %v2314_v16, 4294967292  ;;  %v1222_v26 = vsel %vm1221_vm14, %v1094_v19, 4 }
  0x82   :  { %v2330_v27 = vadd.s32 4294967289, %v974_v20  ;;  %vm1223_vm15 = vcmp.lt.s32.totalorder %v1096_v25, 4  ;;  %v1341_v28 = vadd.s32 4, %v1222_v26  ;;  %v472_v29 = vand.u32 7, %v90_v14 }
  0x83   :  { %vm1125_vm0 = vcmp.gt.s32.totalorder %v2329_v23, 4294967292  ;;  %2464 = vmatmul.msk.bf16.gmra.mxu3 %vm1822_vm7, %v1808_v24  ;;  %v1224_v30 = vsel %vm1223_vm15, %v1096_v25, 4  ;;  %v989_v32 = vmul.u32 2, %v465_v21  ;;  %v105_v55 = vadd.s32 448, %v2594_v1 }
  0x84   :  { %v1126_v31 = vsel %vm1125_vm0, %v2329_v23, 4294967292  ;;  %vm1127_vm1 = vcmp.gt.s32.totalorder %v2330_v27, 4294967292  ;;  %v1342_v33 = vadd.s32 4, %v1224_v30  ;;  %vm1405_vm2 = vcmp.eq.s32.totalorder %v2608_v15, %v1341_v28 }
  0x85   :  { %v1469_v34 = vadd.s32 9, %v1341_v28  ;;  %v1128_v35 = vsel %vm1127_vm1, %v2330_v27, 4294967292  ;;  %vm1253_vm3 = vcmp.lt.s32.totalorder %v1126_v31, 4  ;;  %v990_v36 = vmul.u32 2, %v472_v29 }
  0x86   :  { %vm1255_vm4 = vcmp.lt.s32.totalorder %v1128_v35, 4  ;;  %v2345_v37 = vadd.s32 4294967289, %v989_v32  ;;  %vm1406_vm5 = vcmp.eq.s32.totalorder %v2608_v15, %v1342_v33  ;;  %v1470_v38 = vadd.s32 9, %v1342_v33 }
  0x87   :  { %vm1533_vm6 = vcmp.eq.s32.totalorder %v2608_v15, %v1469_v34  ;;  %v1254_v39 = vsel %vm1253_vm3, %v1126_v31, 4  ;;  %v1256_v40 = vsel %vm1255_vm4, %v1128_v35, 4  ;;  %v2346_v42 = vadd.s32 4294967289, %v990_v36 }
  0x88   :  { %vm1597_vm8 = vmor %vm1405_vm2, %vm1533_vm6  ;;  %v1357_v41 = vadd.s32 4, %v1254_v39  ;;  %vm1157_vm9 = vcmp.gt.s32.totalorder %v2345_v37, 4294967292  ;;  %vm1534_vm10 = vcmp.eq.s32.totalorder %v2608_v15, %v1470_v38  ;;  %v1358_v44 = vadd.s32 4, %v1256_v40 }
  0x89   :  { %v2377_v43 = vsel %vm1597_vm8, 1.0, %v2568_v53  ;;  %v1158_v45 = vsel %vm1157_vm9, %v2345_v37, 4294967292  ;;  %vm1598_vm11 = vmor %vm1406_vm5, %vm1534_vm10  ;;  %vm1159_vm13 = vcmp.gt.s32.totalorder %v2346_v42, 4294967292  ;;  %v106_v58 = vadd.s32 456, %v2594_v1 }
  0x8a   :  { %vm1421_vm12 = vcmp.eq.s32.totalorder %v2608_v15, %v1357_v41  ;;  %v1485_v46 = vadd.s32 9, %v1357_v41  ;;  %vm1285_vm14 = vcmp.lt.s32.totalorder %v1158_v45, 4  ;;  %v2378_v47 = vsel %vm1598_vm11, 1.0, %v2568_v53 }
  0x8b   :  { %vm1422_vm15 = vcmp.eq.s32.totalorder %v2608_v15, %v1358_v44  ;;  %v1486_v48 = vadd.s32 9, %v1358_v44  ;;  %v1160_v49 = vsel %vm1159_vm13, %v2346_v42, 4294967292  ;;  %v1785_v50 = vpack.c.bf16 %v2378_v47, %v2377_v43 }
  0x8c   :  { %vm1549_vm0 = vcmp.eq.s32.totalorder %v2608_v15, %v1485_v46  ;;  %v1286_v51 = vsel %vm1285_vm14, %v1158_v45, 4  ;;  %vm1287_vm1 = vcmp.lt.s32.totalorder %v1160_v49, 4  ;;  %v59_v59 = vadd.s32 80, %v2594_v1 }
  0x8d   :  { %vm1550_vm2 = vcmp.eq.s32.totalorder %v2608_v15, %v1486_v48  ;;  %vm1613_vm3 = vmor %vm1421_vm12, %vm1549_vm0  ;;  %v1288_v52 = vsel %vm1287_vm1, %v1160_v49, 4  ;;  %v1373_v54 = vadd.s32 4, %v1286_v51  ;;  %2441 = vmatmul.msk.bf16.gmra.mxu0 %vm1822_vm7, %v1785_v50  ;;  %v577_v62 = vand.u32 7, %v105_v55 }
  0x8e   :  { %vm1614_vm4 = vmor %vm1422_vm15, %vm1550_vm2  ;;  %v2393_v56 = vsel %vm1613_vm3, 1.0, %v2568_v53  ;;  %v1374_v57 = vadd.s32 4, %v1288_v52  ;;  %v584_v2 = vand.u32 7, %v106_v58  ;;  %v60_v4 = vadd.s32 88, %v2594_v1 }
  0x8f   :  { %v2394_v60 = vsel %vm1614_vm4, 1.0, %v2568_v53  ;;  %vm1437_vm5 = vcmp.eq.s32.totalorder %v2608_v15, %v1373_v54  ;;  %v1501_v61 = vadd.s32 9, %v1373_v54  ;;  %v1005_v3 = vmul.u32 2, %v577_v62 }
  0x90   :  { %v1793_v63 = vpack.c.bf16 %v2394_v60, %v2393_v56  ;;  %vm1438_vm6 = vcmp.eq.s32.totalorder %v2608_v15, %v1374_v57  ;;  %v1502_v0 = vadd.s32 9, %v1374_v57  ;;  %v255_v5 = vand.u32 7, %v59_v59 }
  0x91   :  { %vm1565_vm8 = vcmp.eq.s32.totalorder %v2608_v15, %v1501_v61  ;;  %v1006_v6 = vmul.u32 2, %v584_v2  ;;  %v75_v7 = vadd.s32 208, %v2594_v1  ;;  %v76_v8 = vadd.s32 216, %v2594_v1 }
  0x92   :  { %2449 = vmatmul.msk.bf16.gmra.mxu1 %vm1822_vm7, %v1793_v63  ;;  %vm1566_vm9 = vcmp.eq.s32.totalorder %v2608_v15, %v1502_v0  ;;  %vm1629_vm10 = vmor %vm1437_vm5, %vm1565_vm8  ;;  %v2361_v10 = vadd.s32 4294967289, %v1005_v3  ;;  %v262_v11 = vand.u32 7, %v60_v4  ;;  %v959_v12 = vmul.u32 2, %v255_v5 }
  0x93   :  { %vm1630_vm11 = vmor %vm1438_vm6, %vm1566_vm9  ;;  %v2409_v9 = vsel %vm1629_vm10, 1.0, %v2568_v53  ;;  %v2362_v14 = vadd.s32 4294967289, %v1006_v6  ;;  %v367_v16 = vand.u32 7, %v75_v7  ;;  %v374_v17 = vand.u32 7, %v76_v8 }
  0x94   :  { %v2410_v13 = vsel %vm1630_vm11, 1.0, %v2568_v53  ;;  %vm1189_vm12 = vcmp.gt.s32.totalorder %v2361_v10, 4294967292  ;;  %v960_v19 = vmul.u32 2, %v262_v11  ;;  %v2315_v20 = vadd.s32 4294967289, %v959_v12 }
  0x95   :  { %v1801_v18 = vpack.c.bf16 %v2410_v13, %v2409_v9  ;;  %v1190_v21 = vsel %vm1189_vm12, %v2361_v10, 4294967292  ;;  %vm1191_vm13 = vcmp.gt.s32.totalorder %v2362_v14, 4294967292  ;;  %v975_v22 = vmul.u32 2, %v367_v16 }
  0x96   :  { %v976_v23 = vmul.u32 2, %v374_v17  ;;  %v1192_v24 = vsel %vm1191_vm13, %v2362_v14, 4294967292  ;;  %vm1317_vm14 = vcmp.lt.s32.totalorder %v1190_v21, 4  ;;  %v2316_v25 = vadd.s32 4294967289, %v960_v19 }
  0x97   :  { %2457 = vmatmul.msk.bf16.gmra.mxu2 %vm1822_vm7, %v1801_v18  ;;  %vm1097_vm15 = vcmp.gt.s32.totalorder %v2315_v20, 4294967292  ;;  %v1318_v26 = vsel %vm1317_vm14, %v1190_v21, 4  ;;  %vm1319_vm0 = vcmp.lt.s32.totalorder %v1192_v24, 4  ;;  %v2331_v28 = vadd.s32 4294967289, %v975_v22 }
  0x98   :  { %v1098_v27 = vsel %vm1097_vm15, %v2315_v20, 4294967292  ;;  %v1320_v29 = vsel %vm1319_vm0, %v1192_v24, 4  ;;  %v1389_v30 = vadd.s32 4, %v1318_v26  ;;  %vm1099_vm1 = vcmp.gt.s32.totalorder %v2316_v25, 4294967292 }
  0x99   :  { %vm1225_vm2 = vcmp.lt.s32.totalorder %v1098_v27, 4  ;;  %v1390_v31 = vadd.s32 4, %v1320_v29  ;;  %v1100_v32 = vsel %vm1099_vm1, %v2316_v25, 4294967292  ;;  %v2332_v34 = vadd.s32 4294967289, %v976_v23 }
  0x9a   :  { %v1226_v33 = vsel %vm1225_vm2, %v1098_v27, 4  ;;  %vm1453_vm3 = vcmp.eq.s32.totalorder %v2608_v15, %v1389_v30  ;;  %v1517_v35 = vadd.s32 9, %v1389_v30  ;;  %vm1227_vm4 = vcmp.lt.s32.totalorder %v1100_v32, 4 }
  0x9b   :  { %v1343_v36 = vadd.s32 4, %v1226_v33  ;;  %vm1454_vm5 = vcmp.eq.s32.totalorder %v2608_v15, %v1390_v31  ;;  %v1518_v37 = vadd.s32 9, %v1390_v31  ;;  %v1228_v38 = vsel %vm1227_vm4, %v1100_v32, 4 }
  0x9c   :  { %vm1129_vm6 = vcmp.gt.s32.totalorder %v2331_v28, 4294967292  ;;  %vm1581_vm8 = vcmp.eq.s32.totalorder %v2608_v15, %v1517_v35  ;;  %v1344_v39 = vadd.s32 4, %v1228_v38  ;;  %vm1131_vm12 = vcmp.gt.s32.totalorder %v2332_v34, 4294967292 }
  0x9d   :  { %vm1407_vm9 = vcmp.eq.s32.totalorder %v2608_v15, %v1343_v36  ;;  %v1471_v40 = vadd.s32 9, %v1343_v36  ;;  %vm1582_vm10 = vcmp.eq.s32.totalorder %v2608_v15, %v1518_v37  ;;  %vm1645_vm11 = vmor %vm1453_vm3, %vm1581_vm8  ;;  %v1130_v41 = vsel %vm1129_vm6, %v2331_v28, 4294967292 }
  0x9e   :  { %v91_v42 = vadd.s32 336, %v2594_v1  ;;  %vm1646_vm13 = vmor %vm1454_vm5, %vm1582_vm10  ;;  %v2425_v43 = vsel %vm1645_vm11, 1.0, %v2568_v53  ;;  %vm1408_vm14 = vcmp.eq.s32.totalorder %v2608_v15, %v1344_v39  ;;  %v1472_v44 = vadd.s32 9, %v1344_v39 }
  0x9f   :  { %vm1535_vm15 = vcmp.eq.s32.totalorder %v2608_v15, %v1471_v40  ;;  %v2426_v45 = vsel %vm1646_vm13, 1.0, %v2568_v53  ;;  %v1132_v46 = vsel %vm1131_vm12, %v2332_v34, 4294967292  ;;  %vm1257_vm1 = vcmp.lt.s32.totalorder %v1130_v41, 4 }
  0xa0   :  { %vm1599_vm0 = vmor %vm1407_vm9, %vm1535_vm15  ;;  %v92_v47 = vadd.s32 344, %v2594_v1  ;;  %v1809_v48 = vpack.c.bf16 %v2426_v45, %v2425_v43  ;;  %vm1536_vm2 = vcmp.eq.s32.totalorder %v2608_v15, %v1472_v44  ;;  %v1258_v50 = vsel %vm1257_vm1, %v1130_v41, 4 }
  0xa1   :  { %v2379_v49 = vsel %vm1599_vm0, 1.0, %v2568_v53  ;;  %vm1600_vm3 = vmor %vm1408_vm14, %vm1536_vm2  ;;  %vm1259_vm4 = vcmp.lt.s32.totalorder %v1132_v46, 4  ;;  %v1359_v51 = vadd.s32 4, %v1258_v50  ;;  %v479_v52 = vand.u32 7, %v91_v42 }
  0xa2   :  { %v486_v54 = vand.u32 7, %v92_v47  ;;  %2465 = vmatmul.msk.bf16.gmra.mxu3 %vm1822_vm7, %v1809_v48  ;;  %v2380_v55 = vsel %vm1600_vm3, 1.0, %v2568_v53  ;;  %v1260_v56 = vsel %vm1259_vm4, %v1132_v46, 4  ;;  %v107_v57 = vadd.s32 464, %v2594_v1 }
  0xa3   :  { %v108_v58 = vadd.s32 472, %v2594_v1  ;;  %v1786_v59 = vpack.c.bf16 %v2380_v55, %v2379_v49  ;;  %v1360_v60 = vadd.s32 4, %v1260_v56  ;;  %vm1423_vm5 = vcmp.eq.s32.totalorder %v2608_v15, %v1359_v51 }
  0xa4   :  { %v1487_v61 = vadd.s32 9, %v1359_v51  ;;  %v991_v62 = vmul.u32 2, %v479_v52  ;;  %v992_v63 = vmul.u32 2, %v486_v54  ;;  %v591_v0 = vand.u32 7, %v107_v57 }
  0xa5   :  { %v598_v2 = vand.u32 7, %v108_v58  ;;  %2442 = vmatmul.msk.bf16.gmra.mxu0 %vm1822_vm7, %v1786_v59  ;;  %vm1424_vm6 = vcmp.eq.s32.totalorder %v2608_v15, %v1360_v60  ;;  %v1488_v3 = vadd.s32 9, %v1360_v60  ;;  %v61_v4 = vadd.s32 96, %v2594_v1 }
  0xa6   :  { %vm1551_vm8 = vcmp.eq.s32.totalorder %v2608_v15, %v1487_v61  ;;  %v2347_v5 = vadd.s32 4294967289, %v991_v62  ;;  %v2348_v6 = vadd.s32 4294967289, %v992_v63  ;;  %v1007_v7 = vmul.u32 2, %v591_v0 }
  0xa7   :  { %vm1615_vm9 = vmor %vm1423_vm5, %vm1551_vm8  ;;  %v1008_v8 = vmul.u32 2, %v598_v2  ;;  %vm1552_vm10 = vcmp.eq.s32.totalorder %v2608_v15, %v1488_v3  ;;  %v62_v10 = vadd.s32 104, %v2594_v1  ;;  %v269_v11 = vand.u32 7, %v61_v4 }
  0xa8   :  { %v2395_v9 = vsel %vm1615_vm9, 1.0, %v2568_v53  ;;  %vm1616_vm11 = vmor %vm1424_vm6, %vm1552_vm10  ;;  %vm1161_vm12 = vcmp.gt.s32.totalorder %v2347_v5, 4294967292  ;;  %vm1163_vm13 = vcmp.gt.s32.totalorder %v2348_v6, 4294967292  ;;  %v2363_v12 = vadd.s32 4294967289, %v1007_v7 }
  0xa9   :  { %v2364_v13 = vadd.s32 4294967289, %v1008_v8  ;;  %v2396_v14 = vsel %vm1616_vm11, 1.0, %v2568_v53  ;;  %v1162_v16 = vsel %vm1161_vm12, %v2347_v5, 4294967292  ;;  %v1164_v17 = vsel %vm1163_vm13, %v2348_v6, 4294967292 }
  0xaa   :  { %v276_v18 = vand.u32 7, %v62_v10  ;;  %v1794_v19 = vpack.c.bf16 %v2396_v14, %v2395_v9  ;;  %vm1289_vm14 = vcmp.lt.s32.totalorder %v1162_v16, 4  ;;  %vm1291_vm15 = vcmp.lt.s32.totalorder %v1164_v17, 4 }
  0xab   :  { %vm1193_vm0 = vcmp.gt.s32.totalorder %v2363_v12, 4294967292  ;;  %v1290_v20 = vsel %vm1289_vm14, %v1162_v16, 4  ;;  %v1292_v21 = vsel %vm1291_vm15, %v1164_v17, 4  ;;  %vm1195_vm1 = vcmp.gt.s32.totalorder %v2364_v13, 4294967292 }
  0xac   :  { %v1194_v22 = vsel %vm1193_vm0, %v2363_v12, 4294967292  ;;  %2450 = vmatmul.msk.bf16.gmra.mxu1 %vm1822_vm7, %v1794_v19  ;;  %v1375_v23 = vadd.s32 4, %v1290_v20  ;;  %v1376_v24 = vadd.s32 4, %v1292_v21  ;;  %v1196_v25 = vsel %vm1195_vm1, %v2364_v13, 4294967292 }
  0xad   :  { %vm1321_vm2 = vcmp.lt.s32.totalorder %v1194_v22, 4  ;;  %vm1323_vm3 = vcmp.lt.s32.totalorder %v1196_v25, 4  ;;  %v961_v27 = vmul.u32 2, %v269_v11  ;;  %v962_v28 = vmul.u32 2, %v276_v18 }
  0xae   :  { %v1322_v26 = vsel %vm1321_vm2, %v1194_v22, 4  ;;  %vm1439_vm4 = vcmp.eq.s32.totalorder %v2608_v15, %v1375_v23  ;;  %vm1440_vm5 = vcmp.eq.s32.totalorder %v2608_v15, %v1376_v24  ;;  %v1503_v29 = vadd.s32 9, %v1375_v23 }
  0xaf   :  { %v1504_v30 = vadd.s32 9, %v1376_v24  ;;  %v1324_v31 = vsel %vm1323_vm3, %v1196_v25, 4  ;;  %v1391_v32 = vadd.s32 4, %v1322_v26  ;;  %v2317_v33 = vadd.s32 4294967289, %v961_v27 }
  0xb0   :  { %v2318_v34 = vadd.s32 4294967289, %v962_v28  ;;  %vm1567_vm6 = vcmp.eq.s32.totalorder %v2608_v15, %v1503_v29  ;;  %v1392_v35 = vadd.s32 4, %v1324_v31  ;;  %v77_v36 = vadd.s32 224, %v2594_v1 }
  0xb1   :  { %vm1568_vm8 = vcmp.eq.s32.totalorder %v2608_v15, %v1504_v30  ;;  %vm1631_vm9 = vmor %vm1439_vm4, %vm1567_vm6  ;;  %vm1455_vm10 = vcmp.eq.s32.totalorder %v2608_v15, %v1391_v32  ;;  %v1519_v37 = vadd.s32 9, %v1391_v32  ;;  %vm1101_vm11 = vcmp.gt.s32.totalorder %v2317_v33, 4294967292 }
  0xb2   :  { %vm1103_vm12 = vcmp.gt.s32.totalorder %v2318_v34, 4294967292  ;;  %vm1632_vm13 = vmor %vm1440_vm5, %vm1568_vm8  ;;  %v2411_v38 = vsel %vm1631_vm9, 1.0, %v2568_v53  ;;  %vm1456_vm14 = vcmp.eq.s32.totalorder %v2608_v15, %v1392_v35  ;;  %v1520_v39 = vadd.s32 9, %v1392_v35 }
  0xb3   :  { %v1102_v40 = vsel %vm1101_vm11, %v2317_v33, 4294967292  ;;  %v2412_v41 = vsel %vm1632_vm13, 1.0, %v2568_v53  ;;  %vm1583_vm15 = vcmp.eq.s32.totalorder %v2608_v15, %v1519_v37  ;;  %v1104_v42 = vsel %vm1103_vm12, %v2318_v34, 4294967292 }
  0xb4   :  { %vm1229_vm0 = vcmp.lt.s32.totalorder %v1102_v40, 4  ;;  %v1802_v43 = vpack.c.bf16 %v2412_v41, %v2411_v38  ;;  %vm1584_vm1 = vcmp.eq.s32.totalorder %v2608_v15, %v1520_v39  ;;  %vm1647_vm2 = vmor %vm1455_vm10, %vm1583_vm15  ;;  %vm1231_vm3 = vcmp.lt.s32.totalorder %v1104_v42, 4 }
  0xb5   :  { %v1230_v44 = vsel %vm1229_vm0, %v1102_v40, 4  ;;  %vm1648_vm4 = vmor %vm1456_vm14, %vm1584_vm1  ;;  %v2427_v45 = vsel %vm1647_vm2, 1.0, %v2568_v53  ;;  %v1232_v46 = vsel %vm1231_vm3, %v1104_v42, 4  ;;  %v78_v48 = vadd.s32 232, %v2594_v1 }
  0xb6   :  { %v1345_v47 = vadd.s32 4, %v1230_v44  ;;  %2458 = vmatmul.msk.bf16.gmra.mxu2 %vm1822_vm7, %v1802_v43  ;;  %v2428_v49 = vsel %vm1648_vm4, 1.0, %v2568_v53  ;;  %v1346_v50 = vadd.s32 4, %v1232_v46  ;;  %v381_v51 = vand.u32 7, %v77_v36 }
  0xb7   :  { %v93_v52 = vadd.s32 352, %v2594_v1  ;;  %v1810_v54 = vpack.c.bf16 %v2428_v49, %v2427_v45  ;;  %v388_v56 = vand.u32 7, %v78_v48  ;;  %v94_v59 = vadd.s32 360, %v2594_v1 }
  0xb8   :  { %vm1409_vm5 = vcmp.eq.s32.totalorder %v2608_v15, %v1345_v47  ;;  %v1473_v55 = vadd.s32 9, %v1345_v47  ;;  %vm1410_vm6 = vcmp.eq.s32.totalorder %v2608_v15, %v1346_v50  ;;  %v1474_v57 = vadd.s32 9, %v1346_v50 }
  0xb9   :  { %v977_v58 = vmul.u32 2, %v381_v51  ;;  %2466 = vmatmul.msk.bf16.gmra.mxu3 %vm1822_vm7, %v1810_v54  ;;  %v978_v60 = vmul.u32 2, %v388_v56  ;;  %v493_v61 = vand.u32 7, %v93_v52  ;;  %v109_v62 = vadd.s32 480, %v2594_v1 }
  0xba   :  { %vm1537_vm8 = vcmp.eq.s32.totalorder %v2608_v15, %v1473_v55  ;;  %vm1538_vm9 = vcmp.eq.s32.totalorder %v2608_v15, %v1474_v57  ;;  %v500_v0 = vand.u32 7, %v94_v59  ;;  %v110_v2 = vadd.s32 488, %v2594_v1 }
  0xbb   :  { %vm1601_vm10 = vmor %vm1409_vm5, %vm1537_vm8  ;;  %v2333_v63 = vadd.s32 4294967289, %v977_v58  ;;  %v2334_v4 = vadd.s32 4294967289, %v978_v60  ;;  %v993_v5 = vmul.u32 2, %v493_v61  ;;  %v605_v6 = vand.u32 7, %v109_v62 }
  0xbc   :  { %vm1602_vm11 = vmor %vm1410_vm6, %vm1538_vm9  ;;  %v2381_v3 = vsel %vm1601_vm10, 1.0, %v2568_v53  ;;  %v994_v8 = vmul.u32 2, %v500_v0  ;;  %v612_v9 = vand.u32 7, %v110_v2  ;;  %v63_v43 = vadd.s32 112, %v2594_v1 }
  0xbd   :  { %v2382_v7 = vsel %vm1602_vm11, 1.0, %v2568_v53  ;;  %vm1133_vm12 = vcmp.gt.s32.totalorder %v2333_v63, 4294967292  ;;  %vm1135_vm13 = vcmp.gt.s32.totalorder %v2334_v4, 4294967292  ;;  %v2349_v12 = vadd.s32 4294967289, %v993_v5 }
  0xbe   :  { %v1787_v10 = vpack.c.bf16 %v2382_v7, %v2381_v3  ;;  %v1134_v11 = vsel %vm1133_vm12, %v2333_v63, 4294967292  ;;  %v1136_v13 = vsel %vm1135_vm13, %v2334_v4, 4294967292  ;;  %v2350_v14 = vadd.s32 4294967289, %v994_v8 }
  0xbf   :  { %vm1261_vm14 = vcmp.lt.s32.totalorder %v1134_v11, 4  ;;  %v1009_v16 = vmul.u32 2, %v605_v6  ;;  %vm1263_vm15 = vcmp.lt.s32.totalorder %v1136_v13, 4  ;;  %vm1165_vm0 = vcmp.gt.s32.totalorder %v2349_v12, 4294967292 }
  0xc0   :  { %2443 = vmatmul.msk.bf16.gmra.mxu0 %vm1822_vm7, %v1787_v10  ;;  %v1262_v17 = vsel %vm1261_vm14, %v1134_v11, 4  ;;  %v1010_v18 = vmul.u32 2, %v612_v9  ;;  %v1264_v19 = vsel %vm1263_vm15, %v1136_v13, 4  ;;  %v1166_v21 = vsel %vm1165_vm0, %v2349_v12, 4294967292 }
  0xc1   :  { %v1361_v20 = vadd.s32 4, %v1262_v17  ;;  %vm1167_vm1 = vcmp.gt.s32.totalorder %v2350_v14, 4294967292  ;;  %v1362_v22 = vadd.s32 4, %v1264_v19  ;;  %vm1293_vm2 = vcmp.lt.s32.totalorder %v1166_v21, 4  ;;  %v1932_v17 = vpop.f32.mrf.mxu0 }
  0xc2   :  { %v1168_v23 = vsel %vm1167_vm1, %v2350_v14, 4294967292  ;;  %v2365_v24 = vadd.s32 4294967289, %v1009_v16  ;;  %v1294_v26 = vsel %vm1293_vm2, %v1166_v21, 4  ;;  %v2366_v31 = vadd.s32 4294967289, %v1010_v18  ;;  %v2887_v18 = vpop.f32.mrf.mxu1 }
  0xc3   :  { %vm1425_vm3 = vcmp.eq.s32.totalorder %v2608_v15, %v1361_v20  ;;  %v1489_v25 = vadd.s32 9, %v1361_v20  ;;  %vm1295_vm4 = vcmp.lt.s32.totalorder %v1168_v23, 4  ;;  %vm1426_vm5 = vcmp.eq.s32.totalorder %v2608_v15, %v1362_v22 }
  0xc4   :  { %v1490_v27 = vadd.s32 9, %v1362_v22  ;;  %v1296_v28 = vsel %vm1295_vm4, %v1168_v23, 4  ;;  %v1377_v29 = vadd.s32 4, %v1294_v26  ;;  %vm1197_vm8 = vcmp.gt.s32.totalorder %v2365_v24, 4294967292  ;;  %v2889_v22 = vpop.f32.mrf.mxu2  ;;  %v2891_v23 = vpop.f32.mrf.mxu3 }
  0xc5   :  { %vm1553_vm6 = vcmp.eq.s32.totalorder %v2608_v15, %v1489_v25  ;;  %v1378_v30 = vadd.s32 4, %v1296_v28  ;;  %v1198_v33 = vsel %vm1197_vm8, %v2365_v24, 4294967292  ;;  %vm1199_vm14 = vcmp.gt.s32.totalorder %v2366_v31, 4294967292 }
  0xc6   :  { %vm1554_vm9 = vcmp.eq.s32.totalorder %v2608_v15, %v1490_v27  ;;  %vm1617_vm10 = vmor %vm1425_vm3, %vm1553_vm6  ;;  %vm1441_vm11 = vcmp.eq.s32.totalorder %v2608_v15, %v1377_v29  ;;  %v1505_v32 = vadd.s32 9, %v1377_v29  ;;  %v1200_v37 = vsel %vm1199_vm14, %v2366_v31, 4294967292 }
  0xc7   :  { %vm1618_vm12 = vmor %vm1426_vm5, %vm1554_vm9  ;;  %v2397_v34 = vsel %vm1617_vm10, 1.0, %v2568_v53  ;;  %vm1442_vm13 = vcmp.eq.s32.totalorder %v2608_v15, %v1378_v30  ;;  %v1506_v35 = vadd.s32 9, %v1378_v30  ;;  %vm1325_vm0 = vcmp.lt.s32.totalorder %v1198_v33, 4 }
  0xc8   :  { %v2398_v36 = vsel %vm1618_vm12, 1.0, %v2568_v53  ;;  %vm1569_vm15 = vcmp.eq.s32.totalorder %v2608_v15, %v1505_v32  ;;  %v1326_v39 = vsel %vm1325_vm0, %v1198_v33, 4  ;;  %vm1327_vm3 = vcmp.lt.s32.totalorder %v1200_v37, 4 }
  0xc9   :  { %v1795_v38 = vpack.c.bf16 %v2398_v36, %v2397_v34  ;;  %vm1570_vm1 = vcmp.eq.s32.totalorder %v2608_v15, %v1506_v35  ;;  %vm1633_vm2 = vmor %vm1441_vm11, %vm1569_vm15  ;;  %v1328_v41 = vsel %vm1327_vm3, %v1200_v37, 4  ;;  %v1393_v42 = vadd.s32 4, %v1326_v39  ;;  %v2092_v39 = vld [vmem:[#allocation5] sm:$0xff] }
  0xca   :  { %vm1634_vm4 = vmor %vm1442_vm13, %vm1570_vm1  ;;  %v2413_v40 = vsel %vm1633_vm2, 1.0, %v2568_v53  ;;  %v1394_v45 = vadd.s32 4, %v1328_v41  ;;  %v64_v46 = vadd.s32 120, %v2594_v1  ;;  %v79_v47 = vadd.s32 240, %v2594_v1  ;;  %v1974_v41 = vpop.f32.mrf.mxu1 }
  0xcb   :  { %2451 = vmatmul.msk.bf16.gmra.mxu1 %vm1822_vm7, %v1795_v38  ;;  %v2414_v44 = vsel %vm1634_vm4, 1.0, %v2568_v53  ;;  %vm1457_vm5 = vcmp.eq.s32.totalorder %v2608_v15, %v1393_v42  ;;  %v1521_v49 = vadd.s32 9, %v1393_v42  ;;  %v283_v50 = vand.u32 7, %v63_v43 }
  0xcc   :  { %v1803_v48 = vpack.c.bf16 %v2414_v44, %v2413_v40  ;;  %vm1458_vm6 = vcmp.eq.s32.totalorder %v2608_v15, %v1394_v45  ;;  %v1522_v51 = vadd.s32 9, %v1394_v45  ;;  %v290_v52 = vand.u32 7, %v64_v46  ;;  %v1934_v40 = vpop.f32.mrf.mxu0  ;;  %v2014_v46 = vpop.f32.mrf.mxu2 }
  0xcd   :  { %v80_v54 = vadd.s32 248, %v2594_v1  ;;  %vm1585_vm8 = vcmp.eq.s32.totalorder %v2608_v15, %v1521_v49  ;;  %v963_v55 = vmul.u32 2, %v283_v50  ;;  %v395_v56 = vand.u32 7, %v79_v47  ;;  %v2054_v47 = vpop.f32.mrf.mxu3 }
  0xce   :  { %2459 = vmatmul.msk.bf16.gmra.mxu2 %vm1822_vm7, %v1803_v48  ;;  %v95_v57 = vadd.s32 368, %v2594_v1  ;;  %vm1586_vm9 = vcmp.eq.s32.totalorder %v2608_v15, %v1522_v51  ;;  %vm1649_vm10 = vmor %vm1457_vm5, %vm1585_vm8  ;;  %v964_v58 = vmul.u32 2, %v290_v52  ;;  %v96_v60 = vadd.s32 376, %v2594_v1  ;;  %v2108_v52 = vld [vmem:[#allocation5 + $0x80] sm:$0xff] }
  0xcf   :  { %v402_v59 = vand.u32 7, %v80_v54  ;;  %vm1650_vm11 = vmor %vm1458_vm6, %vm1586_vm9  ;;  %v2429_v61 = vsel %vm1649_vm10, 1.0, %v2568_v53  ;;  %v2319_v62 = vadd.s32 4294967289, %v963_v55  ;;  %v979_v63 = vmul.u32 2, %v395_v56  ;;  %v2124_v54 = vld [vmem:[#allocation5 + $0x100] sm:$0xff] }
  0xd0   :  { %v507_v0 = vand.u32 7, %v95_v57  ;;  %v2430_v2 = vsel %vm1650_vm11, 1.0, %v2568_v53  ;;  %v2320_v3 = vadd.s32 4294967289, %v964_v58  ;;  %v514_v5 = vand.u32 7, %v96_v60  ;;  %v2140_v58 = vld [vmem:[#allocation5 + $0x180] sm:$0xff] }
  0xd1   :  { %v980_v4 = vmul.u32 2, %v402_v59  ;;  %v1811_v6 = vpack.c.bf16 %v2430_v2, %v2429_v61  ;;  %vm1105_vm12 = vcmp.gt.s32.totalorder %v2319_v62, 4294967292  ;;  %v2335_v7 = vadd.s32 4294967289, %v979_v63  ;;  %v2109_v63 = vld [vmem:[#allocation5 + $0x88] sm:$0xff] }
  0xd2   :  { %v995_v8 = vmul.u32 2, %v507_v0  ;;  %v1106_v9 = vsel %vm1105_vm12, %v2319_v62, 4294967292  ;;  %vm1107_vm13 = vcmp.gt.s32.totalorder %v2320_v3, 4294967292  ;;  %v996_v11 = vmul.u32 2, %v514_v5  ;;  %v2093_v62 = vld [vmem:[#allocation5 + $0x8] sm:$0xff] }
  0xd3   :  { %v2336_v10 = vadd.s32 4294967289, %v980_v4  ;;  %2467 = vmatmul.msk.bf16.gmra.mxu3 %vm1822_vm7, %v1811_v6  ;;  %v1108_v12 = vsel %vm1107_vm13, %v2320_v3, 4294967292  ;;  %vm1233_vm14 = vcmp.lt.s32.totalorder %v1106_v9, 4  ;;  %vm1137_vm15 = vcmp.gt.s32.totalorder %v2335_v7, 4294967292  ;;  %v2125_v2 = vld [vmem:[#allocation5 + $0x108] sm:$0xff] }
  0xd4   :  { %v2351_v13 = vadd.s32 4294967289, %v995_v8  ;;  %v1234_v14 = vsel %vm1233_vm14, %v1106_v9, 4  ;;  %vm1235_vm0 = vcmp.lt.s32.totalorder %v1108_v12, 4  ;;  %v1138_v16 = vsel %vm1137_vm15, %v2335_v7, 4294967292  ;;  %v2141_v6 = vld [vmem:[#allocation5 + $0x188] sm:$0xff] }
  0xd5   :  { %vm1139_vm1 = vcmp.gt.s32.totalorder %v2336_v10, 4294967292  ;;  %v1236_v19 = vsel %vm1235_vm0, %v1108_v12, 4  ;;  %v1347_v20 = vadd.s32 4, %v1234_v14  ;;  %vm1265_vm2 = vcmp.lt.s32.totalorder %v1138_v16, 4 }
  0xd6   :  { %v1140_v21 = vsel %vm1139_vm1, %v2336_v10, 4294967292  ;;  %v1348_v24 = vadd.s32 4, %v1236_v19  ;;  %v1266_v25 = vsel %vm1265_vm2, %v1138_v16, 4  ;;  %v2352_v26 = vadd.s32 4294967289, %v996_v11  ;;  %v2094_v10 = vld [vmem:[#allocation5 + $0x10] sm:$0xff]  ;;  %v1937_v16 = vpop.f32.mrf.mxu0 }
  0xd7   :  { %vm1267_vm3 = vcmp.lt.s32.totalorder %v1140_v21, 4  ;;  %vm1411_vm4 = vcmp.eq.s32.totalorder %v2608_v15, %v1347_v20  ;;  %v1475_v27 = vadd.s32 9, %v1347_v20  ;;  %v1363_v29 = vadd.s32 4, %v1266_v25  ;;  %v2142_v25 = vld [vmem:[#allocation5 + $0x190] sm:$0xff] }
  0xd8   :  { %v1268_v28 = vsel %vm1267_vm3, %v1140_v21, 4  ;;  %vm1412_vm5 = vcmp.eq.s32.totalorder %v2608_v15, %v1348_v24  ;;  %v1476_v30 = vadd.s32 9, %v1348_v24  ;;  %vm1169_vm6 = vcmp.gt.s32.totalorder %v2351_v13, 4294967292  ;;  %v2017_v21 = vpop.f32.mrf.mxu2 }
  0xd9   :  { %v1364_v31 = vadd.s32 4, %v1268_v28  ;;  %vm1539_vm8 = vcmp.eq.s32.totalorder %v2608_v15, %v1475_v27  ;;  %vm1427_vm9 = vcmp.eq.s32.totalorder %v2608_v15, %v1363_v29  ;;  %v1491_v32 = vadd.s32 9, %v1363_v29 }
  0xda   :  { %v1170_v33 = vsel %vm1169_vm6, %v2351_v13, 4294967292  ;;  %vm1540_vm10 = vcmp.eq.s32.totalorder %v2608_v15, %v1476_v30  ;;  %vm1603_vm11 = vmor %vm1411_vm4, %vm1539_vm8  ;;  %vm1171_vm13 = vcmp.gt.s32.totalorder %v2352_v26, 4294967292  ;;  %v111_v50 = vadd.s32 496, %v2594_v1 }
  0xdb   :  { %vm1428_vm12 = vcmp.eq.s32.totalorder %v2608_v15, %v1364_v31  ;;  %v1492_v34 = vadd.s32 9, %v1364_v31  ;;  %vm1604_vm14 = vmor %vm1412_vm5, %vm1540_vm10  ;;  %v2383_v35 = vsel %vm1603_vm11, 1.0, %v2568_v53  ;;  %vm1555_vm15 = vcmp.eq.s32.totalorder %v2608_v15, %v1491_v32 }
  0xdc   :  { %v1172_v36 = vsel %vm1171_vm13, %v2352_v26, 4294967292  ;;  %vm1297_vm0 = vcmp.lt.s32.totalorder %v1170_v33, 4  ;;  %v2384_v37 = vsel %vm1604_vm14, 1.0, %v2568_v53  ;;  %vm1619_vm2 = vmor %vm1427_vm9, %vm1555_vm15  ;;  %v112_v51 = vadd.s32 504, %v2594_v1 }
  0xdd   :  { %vm1556_vm1 = vcmp.eq.s32.totalorder %v2608_v15, %v1492_v34  ;;  %v1298_v38 = vsel %vm1297_vm0, %v1170_v33, 4  ;;  %vm1299_vm3 = vcmp.lt.s32.totalorder %v1172_v36, 4  ;;  %v1788_v42 = vpack.c.bf16 %v2384_v37, %v2383_v35  ;;  %v2095_v35 = vld [vmem:[#allocation5 + $0x18] sm:$0xff] }
  0xde   :  { %vm1620_vm4 = vmor %vm1428_vm12, %vm1556_vm1  ;;  %v2399_v43 = vsel %vm1619_vm2, 1.0, %v2568_v53  ;;  %v1300_v44 = vsel %vm1299_vm3, %v1172_v36, 4  ;;  %v1379_v45 = vadd.s32 4, %v1298_v38  ;;  %v2156_v57 = vadd.f32 %v2092_v39, %v1932_v17  ;;  %v1977_v17 = vpop.f32.mrf.mxu1  ;;  %v2111_v36 = vld [vmem:[#allocation5 + $0x98] sm:$0xff] }
  0xdf   :  { %v2400_v48 = vsel %vm1620_vm4, 1.0, %v2568_v53  ;;  %v1380_v49 = vadd.s32 4, %v1300_v44  ;;  %2444 = vmatmul.msk.bf16.gmra.mxu0 %vm1822_vm7, %v1788_v42  ;;  %v619_v60 = vand.u32 7, %v111_v50  ;;  %v626_v61 = vand.u32 7, %v112_v51  ;;  %v2127_v37 = vld [vmem:[#allocation5 + $0x118] sm:$0xff] }
  0xe0   :  { %v1796_v55 = vpack.c.bf16 %v2400_v48, %v2399_v43  ;;  %vm1443_vm5 = vcmp.eq.s32.totalorder %v2608_v15, %v1379_v45  ;;  %v1507_v56 = vadd.s32 9, %v1379_v45  ;;  %vm2220_vm9 = vcmask 818176   ;;  %v2143_v38 = vld [vmem:[#allocation5 + $0x198] sm:$0xff]  ;;  %v2019_v45 = vpop.f32.mrf.mxu2 }
  0xe1   :  { %vm1444_vm6 = vcmp.eq.s32.totalorder %v2608_v15, %v1380_v49  ;;  %v1508_v59 = vadd.s32 9, %v1380_v49  ;;  %v2172_v1 = vadd.f32 %v2108_v52, %v2887_v18  ;;  %v2188_v0 = vadd.f32 %v2124_v54, %v2889_v22  ;;  %2221 = vst.msk [vmem:[#allocation7] sm:$0xff] %vm2220_vm9, %v2156_v57  ;;  %v2110_v18 = vld [vmem:[#allocation5 + $0x90] sm:$0xff]  ;;  %v2096_v52 = vld [vmem:[#allocation5 + $0x20] sm:$0xff] }
  0xe2   :  { %2452 = vmatmul.msk.bf16.gmra.mxu1 %vm1822_vm7, %v1796_v55  ;;  %vm1571_vm8 = vcmp.eq.s32.totalorder %v2608_v15, %v1507_v56  ;;  %v1011_v3 = vmul.u32 2, %v619_v60  ;;  %v1012_v4 = vmul.u32 2, %v626_v61  ;;  %v2204_v5 = vadd.f32 %v2140_v58, %v2891_v23  ;;  %v2126_v22 = vld [vmem:[#allocation5 + $0x110] sm:$0xff]  ;;  %v2057_v23 = vpop.f32.mrf.mxu3  ;;  %v2112_v54 = vld [vmem:[#allocation5 + $0xa0] sm:$0xff] }
  0xe3   :  { %vm1572_vm10 = vcmp.eq.s32.totalorder %v2608_v15, %v1508_v59  ;;  %vm1635_vm11 = vmor %vm1443_vm5, %vm1571_vm8  ;;  %2237 = vst.msk [vmem:[#allocation7 + $0x80] sm:$0xff] %vm2220_vm9, %v2172_v1  ;;  %v2157_v8 = vadd.f32 %v2093_v62, %v1934_v40  ;;  %v2173_v9 = vadd.f32 %v2109_v63, %v1974_v41  ;;  %v2189_v14 = vadd.f32 %v2125_v2, %v2014_v46  ;;  %v1939_v41 = vpop.f32.mrf.mxu0  ;;  %v2128_v55 = vld [vmem:[#allocation5 + $0x120] sm:$0xff]  ;;  %v2113_v1 = vld [vmem:[#allocation5 + $0xa8] sm:$0xff] }
  0xe4   :  { %vm1636_vm12 = vmor %vm1444_vm6, %vm1572_vm10  ;;  %v2415_v7 = vsel %vm1635_vm11, 1.0, %v2568_v53  ;;  %v2367_v12 = vadd.s32 4294967289, %v1011_v3  ;;  %v2368_v13 = vadd.s32 4294967289, %v1012_v4  ;;  %2253 = vst.msk [vmem:[#allocation7 + $0x100] sm:$0xff] %vm2220_vm9, %v2188_v0  ;;  %v2205_v20 = vadd.f32 %v2141_v6, %v2054_v47  ;;  %v2144_v56 = vld [vmem:[#allocation5 + $0x1a0] sm:$0xff]  ;;  %v2129_v0 = vld [vmem:[#allocation5 + $0x128] sm:$0xff] }
  0xe5   :  { %v2416_v11 = vsel %vm1636_vm12, 1.0, %v2568_v53  ;;  %2269 = vst.msk [vmem:[#allocation7 + $0x180] sm:$0xff] %vm2220_vm9, %v2204_v5  ;;  %v2158_v24 = vadd.f32 %v2094_v10, %v1937_v16  ;;  %v2174_v28 = vadd.f32 %v2110_v18, %v1977_v17  ;;  %v2190_v29 = vadd.f32 %v2126_v22, %v2017_v21  ;;  %v2145_v2 = vld [vmem:[#allocation5 + $0x1a8] sm:$0xff]  ;;  %v2146_v17 = vld [vmem:[#allocation5 + $0x1b0] sm:$0xff] }
  0xe6   :  { %v1804_v19 = vpack.c.bf16 %v2416_v11, %v2415_v7  ;;  %vm1201_vm13 = vcmp.gt.s32.totalorder %v2367_v12, 4294967292  ;;  %vm1203_vm14 = vcmp.gt.s32.totalorder %v2368_v13, 4294967292  ;;  %2222 = vst.msk [vmem:[#allocation7 + $0x8] sm:$0xff] %vm2220_vm9, %v2157_v8  ;;  %v2206_v32 = vadd.f32 %v2142_v25, %v2057_v23  ;;  %v1979_v42 = vpop.f32.mrf.mxu1  ;;  %v2098_v11 = vld [vmem:[#allocation5 + $0x30] sm:$0xff]  ;;  %v2115_v25 = vld [vmem:[#allocation5 + $0xb8] sm:$0xff] }
  0xe7   :  { %v1202_v26 = vsel %vm1201_vm13, %v2367_v12, 4294967292  ;;  %v1204_v27 = vsel %vm1203_vm14, %v2368_v13, 4294967292  ;;  %2238 = vst.msk [vmem:[#allocation7 + $0x88] sm:$0xff] %vm2220_vm9, %v2173_v9  ;;  %v2159_v43 = vadd.f32 %v2095_v35, %v1939_v41  ;;  %v2175_v44 = vadd.f32 %v2111_v36, %v1979_v42  ;;  %v2114_v12 = vld [vmem:[#allocation5 + $0xb0] sm:$0xff]  ;;  %v2100_v36 = vld [vmem:[#allocation5 + $0x40] sm:$0xff] }
  0xe8   :  { %2460 = vmatmul.msk.bf16.gmra.mxu2 %vm1822_vm7, %v1804_v19  ;;  %vm1329_vm15 = vcmp.lt.s32.totalorder %v1202_v26, 4  ;;  %vm1331_vm0 = vcmp.lt.s32.totalorder %v1204_v27, 4  ;;  %2254 = vst.msk [vmem:[#allocation7 + $0x108] sm:$0xff] %vm2220_vm9, %v2189_v14  ;;  %v2191_v47 = vadd.f32 %v2127_v37, %v2019_v45  ;;  %v2022_v60 = vpop.f32.mrf.mxu2  ;;  %v2130_v13 = vld [vmem:[#allocation5 + $0x130] sm:$0xff]  ;;  %v2116_v37 = vld [vmem:[#allocation5 + $0xc0] sm:$0xff]  ;;  %v2101_v45 = vld [vmem:[#allocation5 + $0x48] sm:$0xff] }
  0xe9   :  { %v1330_v30 = vsel %vm1329_vm15, %v1202_v26, 4  ;;  %v1332_v31 = vsel %vm1331_vm0, %v1204_v27, 4  ;;  %2270 = vst.msk [vmem:[#allocation7 + $0x188] sm:$0xff] %vm2220_vm9, %v2205_v20  ;;  %v2192_v62 = vadd.f32 %v2128_v55, %v2022_v60  ;;  %v2131_v26 = vld [vmem:[#allocation5 + $0x138] sm:$0xff]  ;;  %v2132_v42 = vld [vmem:[#allocation5 + $0x140] sm:$0xff]  ;;  %v2102_v55 = vld [vmem:[#allocation5 + $0x50] sm:$0xff] }
  0xea   :  { %v1395_v33 = vadd.s32 4, %v1330_v30  ;;  %v1396_v34 = vadd.s32 4, %v1332_v31  ;;  %2223 = vst.msk [vmem:[#allocation7 + $0x10] sm:$0xff] %vm2220_vm9, %v2158_v24  ;;  %v2059_v46 = vpop.f32.mrf.mxu3  ;;  %v2099_v24 = vld [vmem:[#allocation5 + $0x38] sm:$0xff]  ;;  %v2118_v60 = vld [vmem:[#allocation5 + $0xd0] sm:$0xff] }
  0xeb   :  { %2239 = vst.msk [vmem:[#allocation7 + $0x90] sm:$0xff] %vm2220_vm9, %v2174_v28  ;;  %v2207_v48 = vadd.f32 %v2143_v38, %v2059_v46  ;;  %v2117_v46 = vld [vmem:[#allocation5 + $0xc8] sm:$0xff] }
  0xec   :  { %vm1459_vm1 = vcmp.eq.s32.totalorder %v2608_v15, %v1395_v33  ;;  %v1523_v39 = vadd.s32 9, %v1395_v33  ;;  %v1524_v40 = vadd.s32 9, %v1396_v34  ;;  %2255 = vst.msk [vmem:[#allocation7 + $0x110] sm:$0xff] %vm2220_vm9, %v2190_v29  ;;  %vm1460_vm2 = vcmp.eq.s32.totalorder %v2608_v15, %v1396_v34  ;;  %v2147_v29 = vld [vmem:[#allocation5 + $0x1b8] sm:$0xff] }
  0xed   :  { %2271 = vst.msk [vmem:[#allocation7 + $0x190] sm:$0xff] %vm2220_vm9, %v2206_v32 }
  0xee   :  { %vm1587_vm3 = vcmp.eq.s32.totalorder %v2608_v15, %v1523_v39  ;;  %vm1588_vm4 = vcmp.eq.s32.totalorder %v2608_v15, %v1524_v40  ;;  %2224 = vst.msk [vmem:[#allocation7 + $0x18] sm:$0xff] %vm2220_vm9, %v2159_v43  ;;  %v1942_v15 = vpop.f32.mrf.mxu0  ;;  %v1982_v57 = vpop.f32.mrf.mxu1 }
  0xef   :  { %vm1651_vm5 = vmor %vm1459_vm1, %vm1587_vm3  ;;  %2240 = vst.msk [vmem:[#allocation7 + $0x98] sm:$0xff] %vm2220_vm9, %v2175_v44  ;;  %v2160_v58 = vadd.f32 %v2096_v52, %v1942_v15  ;;  %v2176_v59 = vadd.f32 %v2112_v54, %v1982_v57 }
  0xf0   :  { %vm1652_vm6 = vmor %vm1460_vm2, %vm1588_vm4  ;;  %v2431_v49 = vsel %vm1651_vm5, 1.0, %v2568_v53  ;;  %2256 = vst.msk [vmem:[#allocation7 + $0x118] sm:$0xff] %vm2220_vm9, %v2191_v47  ;;  %v2024_v7 = vpop.f32.mrf.mxu2 }
  0xf1   :  { %v2432_v50 = vsel %vm1652_vm6, 1.0, %v2568_v53  ;;  %2272 = vst.msk [vmem:[#allocation7 + $0x198] sm:$0xff] %vm2220_vm9, %v2207_v48  ;;  %v2097_v53 = vld [vmem:[#allocation5 + $0x28] sm:$0xff]  ;;  %v2193_v9 = vadd.f32 %v2129_v0, %v2024_v7  ;;  %v2134_v7 = vld [vmem:[#allocation5 + $0x150] sm:$0xff] }
  0xf2   :  { %v1812_v51 = vpack.c.bf16 %v2432_v50, %v2431_v49  ;;  %v2062_v61 = vpop.f32.mrf.mxu3  ;;  %2225 = vst.msk [vmem:[#allocation7 + $0x20] sm:$0xff] %vm2220_vm9, %v2160_v58 }
  0xf3   :  { %v2208_v63 = vadd.f32 %v2144_v56, %v2062_v61  ;;  %2241 = vst.msk [vmem:[#allocation7 + $0xa0] sm:$0xff] %vm2220_vm9, %v2176_v59  ;;  %v2148_v56 = vld [vmem:[#allocation5 + $0x1c0] sm:$0xff] }
  0xf4   :  { %2468 = vmatmul.msk.bf16.gmra.mxu3 %vm1822_vm7, %v1812_v51  ;;  %2257 = vst.msk [vmem:[#allocation7 + $0x120] sm:$0xff] %vm2220_vm9, %v2192_v62  ;;  %v2133_v51 = vld [vmem:[#allocation5 + $0x148] sm:$0xff] }
  0xf5   :  { %2273 = vst.msk [vmem:[#allocation7 + $0x1a0] sm:$0xff] %vm2220_vm9, %v2208_v63  ;;  %v2103_v63 = vld [vmem:[#allocation5 + $0x58] sm:$0xff] }
  0xf6   :  { %v1944_v3 = vpop.f32.mrf.mxu0  ;;  %v1984_v4 = vpop.f32.mrf.mxu1  ;;  %2258 = vst.msk [vmem:[#allocation7 + $0x128] sm:$0xff] %vm2220_vm9, %v2193_v9 }
  0xf7   :  { %v2161_v5 = vadd.f32 %v2097_v53, %v1944_v3  ;;  %v2177_v6 = vadd.f32 %v2113_v1, %v1984_v4  ;;  %v2149_v53 = vld [vmem:[#allocation5 + $0x1c8] sm:$0xff]  ;;  %v2119_v4 = vld [vmem:[#allocation5 + $0xd8] sm:$0xff] }
  0xf9   :  { %2226 = vst.msk [vmem:[#allocation7 + $0x28] sm:$0xff] %vm2220_vm9, %v2161_v5 }
  0xfa   :  { %v2064_v8 = vpop.f32.mrf.mxu3  ;;  %2242 = vst.msk [vmem:[#allocation7 + $0xa8] sm:$0xff] %vm2220_vm9, %v2177_v6 }
  0xfb   :  { %v2209_v10 = vadd.f32 %v2145_v2, %v2064_v8 }
  0xfd   :  { %2274 = vst.msk [vmem:[#allocation7 + $0x1a8] sm:$0xff] %vm2220_vm9, %v2209_v10  ;;  %v2150_v10 = vld [vmem:[#allocation5 + $0x1d0] sm:$0xff] }
  0xfe   :  { %v1947_v14 = vpop.f32.mrf.mxu0  ;;  %v1987_v16 = vpop.f32.mrf.mxu1 }
  0xff   :  { %v2162_v18 = vadd.f32 %v2098_v11, %v1947_v14  ;;  %v2178_v19 = vadd.f32 %v2114_v12, %v1987_v16  ;;  %v2104_v11 = vld [vmem:[#allocation5 + $0x60] sm:$0xff] }
 0x101   :  { %v2027_v20 = vpop.f32.mrf.mxu2  ;;  %2227 = vst.msk [vmem:[#allocation7 + $0x30] sm:$0xff] %vm2220_vm9, %v2162_v18 }
 0x102   :  { %v2194_v21 = vadd.f32 %v2130_v13, %v2027_v20  ;;  %2243 = vst.msk [vmem:[#allocation7 + $0xb0] sm:$0xff] %vm2220_vm9, %v2178_v19  ;;  %v2151_v20 = vld [vmem:[#allocation5 + $0x1d8] sm:$0xff] }
 0x104   :  { %2259 = vst.msk [vmem:[#allocation7 + $0x130] sm:$0xff] %vm2220_vm9, %v2194_v21  ;;  %v2105_v21 = vld [vmem:[#allocation5 + $0x68] sm:$0xff] }
 0x106   :  { %v2067_v22 = vpop.f32.mrf.mxu3  ;;  %v1949_v27 = vpop.f32.mrf.mxu0 }
 0x107   :  { %v2210_v23 = vadd.f32 %v2146_v17, %v2067_v22  ;;  %v1989_v28 = vpop.f32.mrf.mxu1  ;;  %v2163_v30 = vadd.f32 %v2099_v24, %v1949_v27  ;;  %v2135_v17 = vld [vmem:[#allocation5 + $0x158] sm:$0xff] }
 0x108   :  { %v2179_v31 = vadd.f32 %v2115_v25, %v1989_v28  ;;  %v2120_v25 = vld [vmem:[#allocation5 + $0xe0] sm:$0xff] }
 0x109   :  { %2275 = vst.msk [vmem:[#allocation7 + $0x1b0] sm:$0xff] %vm2220_vm9, %v2210_v23  ;;  %v2029_v32 = vpop.f32.mrf.mxu2 }
 0x10a   :  { %v2195_v33 = vadd.f32 %v2131_v26, %v2029_v32  ;;  %2228 = vst.msk [vmem:[#allocation7 + $0x38] sm:$0xff] %vm2220_vm9, %v2163_v30  ;;  %v2136_v30 = vld [vmem:[#allocation5 + $0x160] sm:$0xff] }
 0x10b   :  { %2244 = vst.msk [vmem:[#allocation7 + $0xb8] sm:$0xff] %vm2220_vm9, %v2179_v31 }
 0x10c   :  { %2260 = vst.msk [vmem:[#allocation7 + $0x138] sm:$0xff] %vm2220_vm9, %v2195_v33 }
 0x10e   :  { %v2069_v34 = vpop.f32.mrf.mxu3  ;;  %v1952_v38 = vpop.f32.mrf.mxu0 }
 0x10f   :  { %v2211_v35 = vadd.f32 %v2147_v29, %v2069_v34  ;;  %v1992_v39 = vpop.f32.mrf.mxu1  ;;  %v2164_v40 = vadd.f32 %v2100_v36, %v1952_v38  ;;  %v2121_v29 = vld [vmem:[#allocation5 + $0xe8] sm:$0xff] }
 0x110   :  { %v2180_v41 = vadd.f32 %v2116_v37, %v1992_v39  ;;  %v2137_v37 = vld [vmem:[#allocation5 + $0x168] sm:$0xff] }
 0x111   :  { %2276 = vst.msk [vmem:[#allocation7 + $0x1b8] sm:$0xff] %vm2220_vm9, %v2211_v35  ;;  %v2152_v35 = vld [vmem:[#allocation5 + $0x1e0] sm:$0xff] }
 0x112   :  { %2229 = vst.msk [vmem:[#allocation7 + $0x40] sm:$0xff] %vm2220_vm9, %v2164_v40 }
 0x113   :  { %2245 = vst.msk [vmem:[#allocation7 + $0xc0] sm:$0xff] %vm2220_vm9, %v2180_v41  ;;  %v2106_v41 = vld [vmem:[#allocation5 + $0x70] sm:$0xff] }
 0x116   :  { %v1954_v47 = vpop.f32.mrf.mxu0 }
 0x117   :  { %v1994_v48 = vpop.f32.mrf.mxu1  ;;  %v2165_v49 = vadd.f32 %v2101_v45, %v1954_v47 }
 0x118   :  { %v2181_v50 = vadd.f32 %v2117_v46, %v1994_v48 }
 0x119   :  { %2230 = vst.msk [vmem:[#allocation7 + $0x48] sm:$0xff] %vm2220_vm9, %v2165_v49 }
 0x11a   :  { %v2032_v43 = vpop.f32.mrf.mxu2  ;;  %2246 = vst.msk [vmem:[#allocation7 + $0xc8] sm:$0xff] %vm2220_vm9, %v2181_v50  ;;  %v2107_v50 = vld [vmem:[#allocation5 + $0x78] sm:$0xff] }
 0x11b   :  { %v2196_v44 = vadd.f32 %v2132_v42, %v2032_v43  ;;  %v2153_v42 = vld [vmem:[#allocation5 + $0x1e8] sm:$0xff] }
 0x11d   :  { %2261 = vst.msk [vmem:[#allocation7 + $0x140] sm:$0xff] %vm2220_vm9, %v2196_v44  ;;  %v2122_v44 = vld [vmem:[#allocation5 + $0xf0] sm:$0xff] }
 0x122   :  { %v2034_v52 = vpop.f32.mrf.mxu2  ;;  %v1957_v15 = vpop.f32.mrf.mxu0 }
 0x123   :  { %v2197_v54 = vadd.f32 %v2133_v51, %v2034_v52  ;;  %v2166_v58 = vadd.f32 %v2102_v55, %v1957_v15  ;;  %v2123_v52 = vld [vmem:[#allocation5 + $0xf8] sm:$0xff]  ;;  %v2138_v15 = vld [vmem:[#allocation5 + $0x170] sm:$0xff] }
 0x125   :  { %2262 = vst.msk [vmem:[#allocation7 + $0x148] sm:$0xff] %vm2220_vm9, %v2197_v54  ;;  %v2072_v57 = vpop.f32.mrf.mxu3 }
 0x126   :  { %v2212_v59 = vadd.f32 %v2148_v56, %v2072_v57  ;;  %2231 = vst.msk [vmem:[#allocation7 + $0x50] sm:$0xff] %vm2220_vm9, %v2166_v58 }
 0x128   :  { %2277 = vst.msk [vmem:[#allocation7 + $0x1c0] sm:$0xff] %vm2220_vm9, %v2212_v59  ;;  %v2139_v59 = vld [vmem:[#allocation5 + $0x178] sm:$0xff] }
 0x129   :  { %v1997_v61 = vpop.f32.mrf.mxu1 }
 0x12a   :  { %v2182_v62 = vadd.f32 %v2118_v60, %v1997_v61  ;;  %v1959_v1 = vpop.f32.mrf.mxu0 }
 0x12b   :  { %v2167_v2 = vadd.f32 %v2103_v63, %v1959_v1  ;;  %v2155_v1 = vld [vmem:[#allocation5 + $0x1f8] sm:$0xff] }
 0x12c   :  { %2247 = vst.msk [vmem:[#allocation7 + $0xd0] sm:$0xff] %vm2220_vm9, %v2182_v62  ;;  %v2154_v62 = vld [vmem:[#allocation5 + $0x1f0] sm:$0xff] }
 0x12d   :  { %v2074_v0 = vpop.f32.mrf.mxu3  ;;  %2232 = vst.msk [vmem:[#allocation7 + $0x58] sm:$0xff] %vm2220_vm9, %v2167_v2 }
 0x12e   :  { %v2213_v3 = vadd.f32 %v2149_v53, %v2074_v0 }
 0x130   :  { %2278 = vst.msk [vmem:[#allocation7 + $0x1c8] sm:$0xff] %vm2220_vm9, %v2213_v3 }
 0x131   :  { %v1999_v5 = vpop.f32.mrf.mxu1 }
 0x132   :  { %v2183_v6 = vadd.f32 %v2119_v4, %v1999_v5 }
 0x134   :  { %2248 = vst.msk [vmem:[#allocation7 + $0xd8] sm:$0xff] %vm2220_vm9, %v2183_v6 }
 0x139   :  { %v2037_v8 = vpop.f32.mrf.mxu2 }
 0x13a   :  { %v2198_v9 = vadd.f32 %v2134_v7, %v2037_v8 }
 0x13c   :  { %2263 = vst.msk [vmem:[#allocation7 + $0x150] sm:$0xff] %vm2220_vm9, %v2198_v9  ;;  %v2077_v12 = vpop.f32.mrf.mxu3 }
 0x13d   :  { %v1962_v13 = vpop.f32.mrf.mxu0  ;;  %v2214_v14 = vadd.f32 %v2150_v10, %v2077_v12 }
 0x13e   :  { %v2168_v16 = vadd.f32 %v2104_v11, %v1962_v13 }
 0x13f   :  { %2279 = vst.msk [vmem:[#allocation7 + $0x1d0] sm:$0xff] %vm2220_vm9, %v2214_v14 }
 0x140   :  { %2233 = vst.msk [vmem:[#allocation7 + $0x60] sm:$0xff] %vm2220_vm9, %v2168_v16 }
 0x141   :  { %v2039_v18 = vpop.f32.mrf.mxu2 }
 0x142   :  { %v2199_v19 = vadd.f32 %v2135_v17, %v2039_v18 }
 0x144   :  { %2264 = vst.msk [vmem:[#allocation7 + $0x158] sm:$0xff] %vm2220_vm9, %v2199_v19  ;;  %v2079_v22 = vpop.f32.mrf.mxu3 }
 0x145   :  { %v1964_v23 = vpop.f32.mrf.mxu0  ;;  %v2215_v24 = vadd.f32 %v2151_v20, %v2079_v22 }
 0x146   :  { %v2169_v26 = vadd.f32 %v2105_v21, %v1964_v23 }
 0x147   :  { %2280 = vst.msk [vmem:[#allocation7 + $0x1d8] sm:$0xff] %vm2220_vm9, %v2215_v24 }
 0x148   :  { %v2002_v27 = vpop.f32.mrf.mxu1  ;;  %2234 = vst.msk [vmem:[#allocation7 + $0x68] sm:$0xff] %vm2220_vm9, %v2169_v26 }
 0x149   :  { %v2184_v28 = vadd.f32 %v2120_v25, %v2002_v27 }
 0x14b   :  { %2249 = vst.msk [vmem:[#allocation7 + $0xe0] sm:$0xff] %vm2220_vm9, %v2184_v28 }
 0x150   :  { %v2004_v31 = vpop.f32.mrf.mxu1 }
 0x151   :  { %v2042_v32 = vpop.f32.mrf.mxu2  ;;  %v2185_v33 = vadd.f32 %v2121_v29, %v2004_v31 }
 0x152   :  { %v2200_v34 = vadd.f32 %v2136_v30, %v2042_v32 }
 0x153   :  { %2250 = vst.msk [vmem:[#allocation7 + $0xe8] sm:$0xff] %vm2220_vm9, %v2185_v33 }
 0x154   :  { %2265 = vst.msk [vmem:[#allocation7 + $0x160] sm:$0xff] %vm2220_vm9, %v2200_v34 }
 0x156   :  { %v2082_v36 = vpop.f32.mrf.mxu3 }
 0x157   :  { %v2216_v38 = vadd.f32 %v2152_v35, %v2082_v36 }
 0x159   :  { %v2044_v39 = vpop.f32.mrf.mxu2  ;;  %2281 = vst.msk [vmem:[#allocation7 + $0x1e0] sm:$0xff] %vm2220_vm9, %v2216_v38 }
 0x15a   :  { %v2201_v40 = vadd.f32 %v2137_v37, %v2044_v39 }
 0x15c   :  { %2266 = vst.msk [vmem:[#allocation7 + $0x168] sm:$0xff] %vm2220_vm9, %v2201_v40  ;;  %v1967_v43 = vpop.f32.mrf.mxu0 }
 0x15d   :  { %v2170_v45 = vadd.f32 %v2106_v41, %v1967_v43 }
 0x15e   :  { %v2084_v46 = vpop.f32.mrf.mxu3 }
 0x15f   :  { %v2007_v47 = vpop.f32.mrf.mxu1  ;;  %v2217_v48 = vadd.f32 %v2153_v42, %v2084_v46  ;;  %2235 = vst.msk [vmem:[#allocation7 + $0x70] sm:$0xff] %vm2220_vm9, %v2170_v45 }
 0x160   :  { %v2186_v49 = vadd.f32 %v2122_v44, %v2007_v47 }
 0x161   :  { %2282 = vst.msk [vmem:[#allocation7 + $0x1e8] sm:$0xff] %vm2220_vm9, %v2217_v48 }
 0x162   :  { %2251 = vst.msk [vmem:[#allocation7 + $0xf0] sm:$0xff] %vm2220_vm9, %v2186_v49 }
 0x164   :  { %v1969_v51 = vpop.f32.mrf.mxu0 }
 0x165   :  { %v2171_v54 = vadd.f32 %v2107_v50, %v1969_v51 }
 0x167   :  { %v2009_v55 = vpop.f32.mrf.mxu1  ;;  %2236 = vst.msk [vmem:[#allocation7 + $0x78] sm:$0xff] %vm2220_vm9, %v2171_v54 }
 0x168   :  { %v2187_v56 = vadd.f32 %v2123_v52, %v2009_v55 }
 0x16a   :  { %2252 = vst.msk [vmem:[#allocation7 + $0xf8] sm:$0xff] %vm2220_vm9, %v2187_v56 }
 0x16b   :  { %v2047_v57 = vpop.f32.mrf.mxu2 }
 0x16c   :  { %v2202_v58 = vadd.f32 %v2138_v15, %v2047_v57 }
 0x16e   :  { %2267 = vst.msk [vmem:[#allocation7 + $0x170] sm:$0xff] %vm2220_vm9, %v2202_v58 }
 0x173   :  { %v2049_v60 = vpop.f32.mrf.mxu2 }
 0x174   :  { %v2203_v61 = vadd.f32 %v2139_v59, %v2049_v60 }
 0x176   :  { %2268 = vst.msk [vmem:[#allocation7 + $0x178] sm:$0xff] %vm2220_vm9, %v2203_v61 }
 0x177   :  { %v2087_v63 = vpop.f32.mrf.mxu3 }
 0x178   :  { %v2218_v53 = vadd.f32 %v2154_v62, %v2087_v63 }
 0x17a   :  { %2283 = vst.msk [vmem:[#allocation7 + $0x1f0] sm:$0xff] %vm2220_vm9, %v2218_v53 }
 0x17f   :  { %v2089_v0 = vpop.f32.mrf.mxu3 }
 0x180   :  { %v2219_v2 = vadd.f32 %v2155_v1, %v2089_v0 }
 0x182   :  { %2284 = vst.msk [vmem:[#allocation7 + $0x1f8] sm:$0xff] %vm2220_vm9, %v2219_v2 }
 0x183   :  { %2297 = dma.vmem_to_hbm [thread:$0]  %s2290_s1, 8192, %s2292_s25, [#allocation4], %s2566_s21, %s2566_s21, %s2567_s22  }
 0x184   :  { %2560 = dma.done.wait [#allocation4], 8192  }
 0x185   :  { %2561 = vsyncadd [#allocation4], 4294959104 }
 0x186   :  { %2302 = vsyncpa [#allocation3], 1 }
 0x187   :  { %2303 = vsyncpa [#allocation6], 1 }
 0x188   :  { %2304 = vsyncpa [#allocation4], 1 }

</bundles_post_ra>
